<compile_context>
chip_gen: v6e
topology: v6e:2x2x1
jax: 0.10.0
libtpu: 0.0.40
codegen_flags: <defaults>
</compile_context>

<pallas_src>
import functools
import math
import operator

import jax
import jax.numpy as jnp
import numpy as np
from jax.experimental import pallas as pl
from jax.experimental.pallas import tpu as pltpu


# ----------------------------------------------------------------------------
# Kernel 1: single pass per row tile.
#   u        = exp((x_i . x_j) / T)          (tm, B)  -> written once, f32
#   row_sum  = sum_{j != i} u[i, j]          (tm, 1)
#   pos_num  = u[i, pos0(i)]                 (tm, 1)
# Z / probs / 1/Z scaling happen in the (tiny) wrapper.
# ----------------------------------------------------------------------------
def _nce_sim_kernel(xs_tile_ref, x_all_ref, pos0_ref,
                    u_ref, rowsum_ref, posnum_ref):
    i = pl.program_id(0)
    tm = xs_tile_ref.shape[0]
    b = x_all_ref.shape[0]

    # bf16 x bf16 -> f32 accumulate on the MXU; 1/T already folded into the
    # LHS tile (before the bf16 cast, in the wrapper).  Contract over D
    # directly (no transpose of the (B, D) slab).
    gram = jax.lax.dot_general(
        xs_tile_ref[...], x_all_ref[...],
        dimension_numbers=(((1,), (1,)), ((), ())),
        preferred_element_type=jnp.float32)                       # (tm, B)
    u = jnp.exp(gram)

    col_ids = jax.lax.broadcasted_iota(jnp.int32, (tm, b), 1)
    row_ids = i * tm + jax.lax.broadcasted_iota(jnp.int32, (tm, b), 0)

    # Exact diagonal drop (index-based; see header note on why not analytic).
    u_off = jnp.where(row_ids == col_ids, 0.0, u)
    u_ref[...] = u_off                                            # diag is 0;
    # the wrapper's [pos|neg] gather never reads the diagonal anyway.

    rowsum_ref[...] = jnp.sum(u_off, axis=1, keepdims=True)
    # int32 compare against the int col iota (pos0 kept int32).
    posnum_ref[...] = jnp.sum(
        jnp.where(col_ids == pos0_ref[...], u, 0.0), axis=1, keepdims=True)


def _pick_tile_m(b, d, budget_bytes=24 << 20):
    """Largest divisor of b that is a multiple of 8 (or b itself), <=256,
    whose double-buffered blocks fit the VMEM budget."""
    cands = [t for t in range(min(b, 256), 0, -1)
             if b % t == 0 and (t % 8 == 0 or t == b)]
    if not cands:
        cands = [b]
    resident = 2 * b * d * 2                      # x_all (bf16), 2 buffers
    for t in cands:
        per_tile = t * b * 4 + t * d * 2 + 2 * t * 4   # u out + lhs + partials
        if resident + 2 * per_tile <= budget_bytes:
            return t
    return cands[-1]


def nce_similarity(x, pos0_col, *, temperature, tile_m=None):
    b, d = x.shape
    if tile_m is None:
        tile_m = _pick_tile_m(b, d)
    n_tiles = b // tile_m
    inv_t = 1.0 / float(temperature)

    # Fold 1/T into the (small) LHS operand BEFORE the bf16 cast.
    x_scaled = (x * inv_t).astype(jnp.bfloat16)
    x_bf16 = x.astype(jnp.bfloat16)

    return pl.pallas_call(
        _nce_sim_kernel,
        out_shape=(
            jax.ShapeDtypeStruct((b, b), jnp.float32),   # exp(sim/T), unnorm.
            jax.ShapeDtypeStruct((b, 1), jnp.float32),   # off-diag row sums
            jax.ShapeDtypeStruct((b, 1), jnp.float32),   # u at first positive
        ),
        grid=(n_tiles,),
        in_specs=[
            pl.BlockSpec((tile_m, d), lambda i: (i, 0)),   # scaled x row tile
            pl.BlockSpec((b, d), lambda i: (0, 0)),        # x (resident, bf16)
            pl.BlockSpec((tile_m, 1), lambda i: (i, 0)),   # first-pos col i32
        ],
        out_specs=(
            pl.BlockSpec((tile_m, b), lambda i: (i, 0)),
            pl.BlockSpec((tile_m, 1), lambda i: (i, 0)),
            pl.BlockSpec((tile_m, 1), lambda i: (i, 0)),
        ),
        compiler_params=pltpu.CompilerParams(
            dimension_semantics=("parallel",),             # megacore-friendly
            vmem_limit_bytes=32 * 1024 * 1024),
    )(x_scaled, x_bf16, pos0_col)


# ----------------------------------------------------------------------------
# Kernel 2: in-place memory bank update.
#   memory[idxs] = l2_normalize(memory[idxs]*m + (1-m)*x)
# Bank never leaves HBM (pl.ANY) and the output aliases the input.  Row DMAs
# are pipelined: all gathers in flight up-front, each scatter starts as soon
# as its row is blended.
# ----------------------------------------------------------------------------
def _memory_update_kernel(idxs_ref, x_ref, mem_in_ref, mem_out_ref,
                          rowbuf, sems, *, momentum, eps):
    n_rows = x_ref.shape[0]

    # Hoist all SMEM scalar reads before any DMA wait.
    rows = [idxs_ref[r] for r in range(n_rows)]

    # Start every gather; they all stay in flight concurrently.
    for r in range(n_rows):
        pltpu.make_async_copy(mem_in_ref.at[pl.ds(rows[r], 1)],
                              rowbuf.at[pl.ds(r, 1)],
                              sems.at[r]).start()

    # wait gather r -> blend + normalize -> start scatter r (later gathers
    # still in flight; scatters overlap the remaining work).
    for r in range(n_rows):
        pltpu.make_async_copy(mem_in_ref.at[pl.ds(rows[r], 1)],
                              rowbuf.at[pl.ds(r, 1)],
                              sems.at[r]).wait()
        old = rowbuf[pl.ds(r, 1), :]
        blended = old * momentum + (1.0 - momentum) * x_ref[pl.ds(r, 1), :]
        # NOTE: eps inside the rsqrt differs negligibly from torch's
        # pow(0.5)/div l2_normalize.
        inv_norm = jax.lax.rsqrt(
            jnp.sum(blended * blended, axis=1, keepdims=True) + eps)
        rowbuf[pl.ds(r, 1), :] = blended * inv_norm
        pltpu.make_async_copy(rowbuf.at[pl.ds(r, 1)],
                              mem_out_ref.at[pl.ds(rows[r], 1)],
                              sems.at[r]).start()

    # Drain the scatters.
    for r in range(n_rows):
        pltpu.make_async_copy(rowbuf.at[pl.ds(r, 1)],
                              mem_out_ref.at[pl.ds(rows[r], 1)],
                              sems.at[r]).wait()
    # NOTE: duplicate idxs -> last writer wins (same as torch scatter_).


def memory_bank_update(memory, x, idxs, *, momentum, eps=1e-12):
    b, d = x.shape
    out_size = memory.shape[0]
    kernel = functools.partial(_memory_update_kernel,
                               momentum=float(momentum), eps=float(eps))
    return pl.pallas_call(
        kernel,
        out_shape=jax.ShapeDtypeStruct((out_size, d), jnp.float32),
        in_specs=[
            pl.BlockSpec(memory_space=pltpu.MemorySpace.SMEM),   # idxs (B,) i32
            pl.BlockSpec(memory_space=pltpu.MemorySpace.VMEM),   # x (B, D)
            pl.BlockSpec(memory_space=pl.ANY),                   # bank (HBM)
        ],
        out_specs=pl.BlockSpec(memory_space=pl.ANY),
        scratch_shapes=[
            pltpu.VMEM((b, d), jnp.float32),
            pltpu.SemaphoreType.DMA((b,)),
        ],
        input_output_aliases={2: 0},   # memory bank updated in place
    )(idxs, x, memory)


# ----------------------------------------------------------------------------
# Jitted forward (single compiled program; memory bank donated -> in place).
# ----------------------------------------------------------------------------
def _build_forward(full_indices, pos0_col, temperature, z_momentum,
                   memory_momentum, output_size):
    def fwd(x, idxs, memory, z_old):
        b = x.shape[0]
        u, row_sum, pos_num = nce_similarity(
            x, pos0_col, temperature=temperature)

        # Z momentum / first-call branch and probs from tiny (B,1) partials.
        z_new = jnp.sum(row_sum) * (float(output_size) / (b * (b - 1.0)))
        z = jnp.where(z_old < 0.0,
                      z_new,
                      (1.0 - z_momentum) * z_new + z_momentum * z_old)
        probs = jnp.mean(pos_num / row_sum)          # Z cancels

        # Static [pos | neg] column reorder (torch.cat([pos, neg])); XLA fuses
        # the 1/Z scale into the gather.  The BxB matrix leaves HBM only here.
        outs = jnp.take_along_axis(u, full_indices, axis=1) * (1.0 / z)

        new_memory = memory_bank_update(memory, x, idxs,
                                        momentum=memory_momentum)
        return outs, probs, z, new_memory

    return jax.jit(fwd, donate_argnums=(2,))


class AveragePallas:
    """JAX/Pallas port of the NCE `Average` module (supervised contrastive)."""

    def __init__(self, input_size, output_size, sample_num, class_num, T,
                 Z_momentum=0.9, memory_momentum=0.5, seed=0):
        self.input_size = input_size
        self.output_size = output_size
        self.sample_num = sample_num
        self.class_num = class_num
        # Hyper-parameters stay host-side (no per-step device->host sync);
        # only the running normalizer Z (torch params[0]) lives on device.
        self.T = float(T)
        self.z_momentum = float(Z_momentum)
        self.memory_momentum = float(memory_momentum)
        self.z = jnp.asarray(-1.0, dtype=jnp.float32)

        stdv = 1.0 / math.sqrt(input_size / 3)
        key = jax.random.PRNGKey(seed)
        self.memory = (jax.random.uniform(key, (output_size, input_size),
                                          jnp.float32) * (2 * stdv) - stdv)

        self._prepare_indices()
        self._fwd = _build_forward(self.full_indices, self.pos0_col,
                                   self.T, self.z_momentum,
                                   self.memory_momentum, self.output_size)

    def _prepare_indices(self):
        s, c = self.sample_num, self.class_num
        indices_temp = np.arange(s * c).reshape(c, s).tolist()
        pos = np.zeros((s * c, s - 1), dtype=np.int32)
        neg = np.zeros((s * c, (c - 1) * s), dtype=np.int32)
        for i in range(s * c):
            pos_temp = indices_temp[i // s].copy()
            pos_temp.remove(i)
            neg_temp = [row for j, row in enumerate(indices_temp) if j != i // s]
            pos[i, :] = pos_temp
            neg[i, :] = functools.reduce(operator.iconcat,
                                         [list(r) for r in neg_temp], [])
        # [pos | neg] column order matches torch.cat([pos_logits, neg_logits])
        self.full_indices = jnp.asarray(np.concatenate([pos, neg], axis=1),
                                        dtype=jnp.int32)            # (B, B-1)
        # first positive column per row (int32; compared in-kernel vs iota)
        self.pos0_col = jnp.asarray(pos[:, 0:1], dtype=jnp.int32)   # (B, 1)

    def forward(self, x, idxs):
        # TODO(synk): torch mutates registered buffers in place; here the new
        # bank / Z are rebound functionally (bank update is aliased+donated,
        # so it is still an in-place HBM update).  First-call Z print skipped.
        outs, probs, z_new, new_memory = self._fwd(
            x.astype(jnp.float32), idxs.astype(jnp.int32), self.memory, self.z)
        self.memory = new_memory
        self.z = z_new
        return outs, probs


if __name__ == "__main__":
    input_size = 32      # inputSize  (embedding dim D)
    output_size = 64     # outputSize (memory bank rows)
    sample_num = 4
    class_num = 2
    batch = sample_num * class_num   # B = 8
    temperature = 0.07

    mod = AveragePallas(input_size, output_size, sample_num, class_num,
                        temperature, Z_momentum=0.9, memory_momentum=0.5,
                        seed=0)

    key = jax.random.PRNGKey(0)
    kx, ki = jax.random.split(key)
    x = jax.random.normal(kx, (batch, input_size), jnp.float32)
    x = x / jnp.linalg.norm(x, axis=1, keepdims=True)     # unit embeddings
    idxs = jax.random.permutation(ki, output_size)[:batch].astype(jnp.int32)

    outs, probs = mod.forward(x, idxs)
    jax.block_until_ready((outs, probs, mod.memory, mod.z))

    assert outs.shape == (batch, batch - 1)
    assert probs.shape == ()
    print("KERNEL_OK")
</pallas_src>

<mosaic_0001>
module attributes {stable_mosaic.version = 11 : i64} {
  func.func @_nce_sim_kernel(%arg0: i32, %arg1: memref<8x32xbf16, #tpu.memory_space<vmem>>, %arg2: memref<8x32xbf16, #tpu.memory_space<vmem>>, %arg3: memref<8x1xi32, #tpu.memory_space<vmem>>, %arg4: memref<8x8xf32, #tpu.memory_space<vmem>>, %arg5: memref<8x1xf32, #tpu.memory_space<vmem>>, %arg6: memref<8x1xf32, #tpu.memory_space<vmem>>) attributes {dimension_semantics = [#tpu.dimension_semantics<parallel>], iteration_bounds = array<i64: 1>, scalar_prefetch = 0 : i64, scratch_operands = 0 : i64, tpu.core_type = #tpu.core_type<tc>, window_params = [{transform_indices = @transform_0, window_bounds = array<i64: 8, 32>}, {pipeline_mode = #tpu.pipeline_mode<synchronous>, transform_indices = @transform_1, window_bounds = array<i64: 8, 32>}, {transform_indices = @transform_2, window_bounds = array<i64: 8, 1>}, {transform_indices = @transform_3, window_bounds = array<i64: 8, 8>}, {transform_indices = @transform_4, window_bounds = array<i64: 8, 1>}, {transform_indices = @transform_5, window_bounds = array<i64: 8, 1>}]} {
    %c0 = arith.constant 0 : index
    %c0_0 = arith.constant 0 : index
    %0 = vector.load %arg1[%c0, %c0_0] : memref<8x32xbf16, #tpu.memory_space<vmem>>, vector<8x32xbf16>
    %c0_1 = arith.constant 0 : index
    %c0_2 = arith.constant 0 : index
    %1 = vector.load %arg2[%c0_1, %c0_2] : memref<8x32xbf16, #tpu.memory_space<vmem>>, vector<8x32xbf16>
    %cst = arith.constant dense<0.000000e+00> : vector<8x8xf32>
    %2 = tpu.matmul %0, %1, %cst {dimension_numbers = #tpu.dot_dimension_numbers<[1], [1], [0], [0], [0, 0, 1, 0], [], []>} : vector<8x32xbf16>, vector<8x32xbf16>, vector<8x8xf32> -> vector<8x8xf32>
    %3 = math.exp %2 : vector<8x8xf32>
    %4 = tpu.iota {dimensions = array<i32: 1>} : vector<8x8xi32>
    %c8_i32 = arith.constant 8 : i32
    %5 = arith.muli %arg0, %c8_i32 : i32
    %6 = tpu.iota {dimensions = array<i32: 0>} : vector<8x8xi32>
    %7 = vector.broadcast %5 : i32 to vector<8x8xi32>
    %8 = arith.addi %7, %6 : vector<8x8xi32>
    %9 = arith.cmpi eq, %8, %4 : vector<8x8xi32>
    %cst_3 = arith.constant 0.000000e+00 : f32
    %10 = vector.broadcast %cst_3 : f32 to vector<8x8xf32>
    %11 = arith.select %9, %10, %3 : vector<8x8xi1>, vector<8x8xf32>
    %c0_4 = arith.constant 0 : index
    %c0_5 = arith.constant 0 : index
    %12 = vector.load %arg4[%c0_4, %c0_5] : memref<8x8xf32, #tpu.memory_space<vmem>>, vector<8x8xf32>
    tpu.vector_store %arg4[%c0_4, %c0_5], %11 {strides = array<i32>} : memref<8x8xf32, #tpu.memory_space<vmem>>, vector<8x8xf32>,
    %cst_6 = arith.constant dense<0.000000e+00> : vector<8xf32>
    %13 = vector.multi_reduction <add>, %11, %cst_6 [1] : vector<8x8xf32> to vector<8xf32>
    %14 = vector.shape_cast %13 : vector<8xf32> to vector<8x1xf32>
    %c0_7 = arith.constant 0 : index
    %c0_8 = arith.constant 0 : index
    %15 = vector.load %arg5[%c0_7, %c0_8] : memref<8x1xf32, #tpu.memory_space<vmem>>, vector<8x1xf32>
    tpu.vector_store %arg5[%c0_7, %c0_8], %14 {strides = array<i32>} : memref<8x1xf32, #tpu.memory_space<vmem>>, vector<8x1xf32>,
    %c0_9 = arith.constant 0 : index
    %c0_10 = arith.constant 0 : index
    %16 = vector.load %arg3[%c0_9, %c0_10] : memref<8x1xi32, #tpu.memory_space<vmem>>, vector<8x1xi32>
    %17 = vector.broadcast %16 : vector<8x1xi32> to vector<8x8xi32>
    %18 = arith.cmpi eq, %4, %17 : vector<8x8xi32>
    %cst_11 = arith.constant 0.000000e+00 : f32
    %19 = vector.broadcast %cst_11 : f32 to vector<8x8xf32>
    %20 = arith.select %18, %3, %19 : vector<8x8xi1>, vector<8x8xf32>
    %cst_12 = arith.constant dense<0.000000e+00> : vector<8xf32>
    %21 = vector.multi_reduction <add>, %20, %cst_12 [1] : vector<8x8xf32> to vector<8xf32>
    %22 = vector.shape_cast %21 : vector<8xf32> to vector<8x1xf32>
    %c0_13 = arith.constant 0 : index
    %c0_14 = arith.constant 0 : index
    %23 = vector.load %arg6[%c0_13, %c0_14] : memref<8x1xf32, #tpu.memory_space<vmem>>, vector<8x1xf32>
    tpu.vector_store %arg6[%c0_13, %c0_14], %22 {strides = array<i32>} : memref<8x1xf32, #tpu.memory_space<vmem>>, vector<8x1xf32>,
    return
  }
  func.func @transform_0(%arg0: i32) -> (i32, i32) {
    %c0_i32 = arith.constant 0 : i32
    %c0_i32_0 = arith.constant 0 : i32
    return %arg0, %c0_i32 : i32, i32
  }
  func.func @transform_1(%arg0: i32) -> (i32, i32) {
    %c0_i32 = arith.constant 0 : i32
    %c0_i32_0 = arith.constant 0 : i32
    %c0_i32_1 = arith.constant 0 : i32
    return %c0_i32, %c0_i32_0 : i32, i32
  }
  func.func @transform_2(%arg0: i32) -> (i32, i32) {
    %c0_i32 = arith.constant 0 : i32
    %c0_i32_0 = arith.constant 0 : i32
    return %arg0, %c0_i32 : i32, i32
  }
  func.func @transform_3(%arg0: i32) -> (i32, i32) {
    %c0_i32 = arith.constant 0 : i32
    %c0_i32_0 = arith.constant 0 : i32
    return %arg0, %c0_i32 : i32, i32
  }
  func.func @transform_4(%arg0: i32) -> (i32, i32) {
    %c0_i32 = arith.constant 0 : i32
    %c0_i32_0 = arith.constant 0 : i32
    return %arg0, %c0_i32 : i32, i32
  }
  func.func @transform_5(%arg0: i32) -> (i32, i32) {
    %c0_i32 = arith.constant 0 : i32
    %c0_i32_0 = arith.constant 0 : i32
    return %arg0, %c0_i32 : i32, i32
  }
}

module attributes {stable_mosaic.version = 11 : i64} {
  func.func @_memory_update_kernel(%arg0: memref<8xi32, #tpu.memory_space<smem>>, %arg1: memref<8x32xf32, #tpu.memory_space<vmem>>, %arg2: memref<64x32xf32, #tpu.memory_space<any>>, %arg3: memref<64x32xf32, #tpu.memory_space<any>>, %arg4: memref<8x32xf32, #tpu.memory_space<vmem>>, %arg5: memref<8x!tpu.dma_semaphore, #tpu.memory_space<semaphore_mem>>) attributes {dimension_semantics = [], scalar_prefetch = 0 : i64, scratch_operands = 2 : i64, tpu.core_type = #tpu.core_type<tc>} {
    %c0 = arith.constant 0 : index
    %0 = memref.load %arg0[%c0] : memref<8xi32, #tpu.memory_space<smem>>
    %c1 = arith.constant 1 : index
    %1 = memref.load %arg0[%c1] : memref<8xi32, #tpu.memory_space<smem>>
    %c2 = arith.constant 2 : index
    %2 = memref.load %arg0[%c2] : memref<8xi32, #tpu.memory_space<smem>>
    %c3 = arith.constant 3 : index
    %3 = memref.load %arg0[%c3] : memref<8xi32, #tpu.memory_space<smem>>
    %c4 = arith.constant 4 : index
    %4 = memref.load %arg0[%c4] : memref<8xi32, #tpu.memory_space<smem>>
    %c5 = arith.constant 5 : index
    %5 = memref.load %arg0[%c5] : memref<8xi32, #tpu.memory_space<smem>>
    %c6 = arith.constant 6 : index
    %6 = memref.load %arg0[%c6] : memref<8xi32, #tpu.memory_space<smem>>
    %c7 = arith.constant 7 : index
    %7 = memref.load %arg0[%c7] : memref<8xi32, #tpu.memory_space<smem>>
    %c0_i32 = arith.constant 0 : i32
    %c0_i32_0 = arith.constant 0 : i32
    %8 = tpu.memref_slice %arg2[%0, %c0_i32_0] : memref<64x32xf32, #tpu.memory_space<any>> -> memref<1x32xf32, #tpu.memory_space<any>>
    %c0_i32_1 = arith.constant 0 : i32
    %c0_i32_2 = arith.constant 0 : i32
    %9 = tpu.memref_slice %arg4[%c0_i32_1, %c0_i32_2] : memref<8x32xf32, #tpu.memory_space<vmem>> -> memref<1x32xf32, #tpu.memory_space<vmem>>
    %10 = tpu.memref_slice %arg5[%c0_i32] : memref<8x!tpu.dma_semaphore, #tpu.memory_space<semaphore_mem>> -> memref<1x!tpu.dma_semaphore, #tpu.memory_space<semaphore_mem>>
    %11 = tpu.memref_squeeze %10 : memref<1x!tpu.dma_semaphore, #tpu.memory_space<semaphore_mem>> -> memref<!tpu.dma_semaphore, #tpu.memory_space<semaphore_mem>>
    tpu.enqueue_dma source(%8 : memref<1x32xf32, #tpu.memory_space<any>>) target(%9 : memref<1x32xf32, #tpu.memory_space<vmem>>) target_semaphore(%11 : memref<!tpu.dma_semaphore, #tpu.memory_space<semaphore_mem>>)
    %c1_i32 = arith.constant 1 : i32
    %c0_i32_3 = arith.constant 0 : i32
    %12 = tpu.memref_slice %arg2[%1, %c0_i32_3] : memref<64x32xf32, #tpu.memory_space<any>> -> memref<1x32xf32, #tpu.memory_space<any>>
    %c1_i32_4 = arith.constant 1 : i32
    %c0_i32_5 = arith.constant 0 : i32
    %13 = tpu.memref_slice %arg4[%c1_i32_4, %c0_i32_5] : memref<8x32xf32, #tpu.memory_space<vmem>> -> memref<1x32xf32, #tpu.memory_space<vmem>>
    %14 = tpu.memref_slice %arg5[%c1_i32] : memref<8x!tpu.dma_semaphore, #tpu.memory_space<semaphore_mem>> -> memref<1x!tpu.dma_semaphore, #tpu.memory_space<semaphore_mem>>
    %15 = tpu.memref_squeeze %14 : memref<1x!tpu.dma_semaphore, #tpu.memory_space<semaphore_mem>> -> memref<!tpu.dma_semaphore, #tpu.memory_space<semaphore_mem>>
    tpu.enqueue_dma source(%12 : memref<1x32xf32, #tpu.memory_space<any>>) target(%13 : memref<1x32xf32, #tpu.memory_space<vmem>>) target_semaphore(%15 : memref<!tpu.dma_semaphore, #tpu.memory_space<semaphore_mem>>)
    %c2_i32 = arith.constant 2 : i32
    %c0_i32_6 = arith.constant 0 : i32
    %16 = tpu.memref_slice %arg2[%2, %c0_i32_6] : memref<64x32xf32, #tpu.memory_space<any>> -> memref<1x32xf32, #tpu.memory_space<any>>
    %c2_i32_7 = arith.constant 2 : i32
    %c0_i32_8 = arith.constant 0 : i32
    %17 = tpu.memref_slice %arg4[%c2_i32_7, %c0_i32_8] : memref<8x32xf32, #tpu.memory_space<vmem>> -> memref<1x32xf32, #tpu.memory_space<vmem>>
    %18 = tpu.memref_slice %arg5[%c2_i32] : memref<8x!tpu.dma_semaphore, #tpu.memory_space<semaphore_mem>> -> memref<1x!tpu.dma_semaphore, #tpu.memory_space<semaphore_mem>>
    %19 = tpu.memref_squeeze %18 : memref<1x!tpu.dma_semaphore, #tpu.memory_space<semaphore_mem>> -> memref<!tpu.dma_semaphore, #tpu.memory_space<semaphore_mem>>
    tpu.enqueue_dma source(%16 : memref<1x32xf32, #tpu.memory_space<any>>) target(%17 : memref<1x32xf32, #tpu.memory_space<vmem>>) target_semaphore(%19 : memref<!tpu.dma_semaphore, #tpu.memory_space<semaphore_mem>>)
    %c3_i32 = arith.constant 3 : i32
    %c0_i32_9 = arith.constant 0 : i32
    %20 = tpu.memref_slice %arg2[%3, %c0_i32_9] : memref<64x32xf32, #tpu.memory_space<any>> -> memref<1x32xf32, #tpu.memory_space<any>>
    %c3_i32_10 = arith.constant 3 : i32
    %c0_i32_11 = arith.constant 0 : i32
    %21 = tpu.memref_slice %arg4[%c3_i32_10, %c0_i32_11] : memref<8x32xf32, #tpu.memory_space<vmem>> -> memref<1x32xf32, #tpu.memory_space<vmem>>
    %22 = tpu.memref_slice %arg5[%c3_i32] : memref<8x!tpu.dma_semaphore, #tpu.memory_space<semaphore_mem>> -> memref<1x!tpu.dma_semaphore, #tpu.memory_space<semaphore_mem>>
    %23 = tpu.memref_squeeze %22 : memref<1x!tpu.dma_semaphore, #tpu.memory_space<semaphore_mem>> -> memref<!tpu.dma_semaphore, #tpu.memory_space<semaphore_mem>>
    tpu.enqueue_dma source(%20 : memref<1x32xf32, #tpu.memory_space<any>>) target(%21 : memref<1x32xf32, #tpu.memory_space<vmem>>) target_semaphore(%23 : memref<!tpu.dma_semaphore, #tpu.memory_space<semaphore_mem>>)
    %c4_i32 = arith.constant 4 : i32
    %c0_i32_12 = arith.constant 0 : i32
    %24 = tpu.memref_slice %arg2[%4, %c0_i32_12] : memref<64x32xf32, #tpu.memory_space<any>> -> memref<1x32xf32, #tpu.memory_space<any>>
    %c4_i32_13 = arith.constant 4 : i32
    %c0_i32_14 = arith.constant 0 : i32
    %25 = tpu.memref_slice %arg4[%c4_i32_13, %c0_i32_14] : memref<8x32xf32, #tpu.memory_space<vmem>> -> memref<1x32xf32, #tpu.memory_space<vmem>>
    %26 = tpu.memref_slice %arg5[%c4_i32] : memref<8x!tpu.dma_semaphore, #tpu.memory_space<semaphore_mem>> -> memref<1x!tpu.dma_semaphore, #tpu.memory_space<semaphore_mem>>
    %27 = tpu.memref_squeeze %26 : memref<1x!tpu.dma_semaphore, #tpu.memory_space<semaphore_mem>> -> memref<!tpu.dma_semaphore, #tpu.memory_space<semaphore_mem>>
    tpu.enqueue_dma source(%24 : memref<1x32xf32, #tpu.memory_space<any>>) target(%25 : memref<1x32xf32, #tpu.memory_space<vmem>>) target_semaphore(%27 : memref<!tpu.dma_semaphore, #tpu.memory_space<semaphore_mem>>)
    %c5_i32 = arith.constant 5 : i32
    %c0_i32_15 = arith.constant 0 : i32
    %28 = tpu.memref_slice %arg2[%5, %c0_i32_15] : memref<64x32xf32, #tpu.memory_space<any>> -> memref<1x32xf32, #tpu.memory_space<any>>
    %c5_i32_16 = arith.constant 5 : i32
    %c0_i32_17 = arith.constant 0 : i32
    %29 = tpu.memref_slice %arg4[%c5_i32_16, %c0_i32_17] : memref<8x32xf32, #tpu.memory_space<vmem>> -> memref<1x32xf32, #tpu.memory_space<vmem>>
    %30 = tpu.memref_slice %arg5[%c5_i32] : memref<8x!tpu.dma_semaphore, #tpu.memory_space<semaphore_mem>> -> memref<1x!tpu.dma_semaphore, #tpu.memory_space<semaphore_mem>>
    %31 = tpu.memref_squeeze %30 : memref<1x!tpu.dma_semaphore, #tpu.memory_space<semaphore_mem>> -> memref<!tpu.dma_semaphore, #tpu.memory_space<semaphore_mem>>
    tpu.enqueue_dma source(%28 : memref<1x32xf32, #tpu.memory_space<any>>) target(%29 : memref<1x32xf32, #tpu.memory_space<vmem>>) target_semaphore(%31 : memref<!tpu.dma_semaphore, #tpu.memory_space<semaphore_mem>>)
    %c6_i32 = arith.constant 6 : i32
    %c0_i32_18 = arith.constant 0 : i32
    %32 = tpu.memref_slice %arg2[%6, %c0_i32_18] : memref<64x32xf32, #tpu.memory_space<any>> -> memref<1x32xf32, #tpu.memory_space<any>>
    %c6_i32_19 = arith.constant 6 : i32
    %c0_i32_20 = arith.constant 0 : i32
    %33 = tpu.memref_slice %arg4[%c6_i32_19, %c0_i32_20] : memref<8x32xf32, #tpu.memory_space<vmem>> -> memref<1x32xf32, #tpu.memory_space<vmem>>
    %34 = tpu.memref_slice %arg5[%c6_i32] : memref<8x!tpu.dma_semaphore, #tpu.memory_space<semaphore_mem>> -> memref<1x!tpu.dma_semaphore, #tpu.memory_space<semaphore_mem>>
    %35 = tpu.memref_squeeze %34 : memref<1x!tpu.dma_semaphore, #tpu.memory_space<semaphore_mem>> -> memref<!tpu.dma_semaphore, #tpu.memory_space<semaphore_mem>>
    tpu.enqueue_dma source(%32 : memref<1x32xf32, #tpu.memory_space<any>>) target(%33 : memref<1x32xf32, #tpu.memory_space<vmem>>) target_semaphore(%35 : memref<!tpu.dma_semaphore, #tpu.memory_space<semaphore_mem>>)
    %c7_i32 = arith.constant 7 : i32
    %c0_i32_21 = arith.constant 0 : i32
    %36 = tpu.memref_slice %arg2[%7, %c0_i32_21] : memref<64x32xf32, #tpu.memory_space<any>> -> memref<1x32xf32, #tpu.memory_space<any>>
    %c7_i32_22 = arith.constant 7 : i32
    %c0_i32_23 = arith.constant 0 : i32
    %37 = tpu.memref_slice %arg4[%c7_i32_22, %c0_i32_23] : memref<8x32xf32, #tpu.memory_space<vmem>> -> memref<1x32xf32, #tpu.memory_space<vmem>>
    %38 = tpu.memref_slice %arg5[%c7_i32] : memref<8x!tpu.dma_semaphore, #tpu.memory_space<semaphore_mem>> -> memref<1x!tpu.dma_semaphore, #tpu.memory_space<semaphore_mem>>
    %39 = tpu.memref_squeeze %38 : memref<1x!tpu.dma_semaphore, #tpu.memory_space<semaphore_mem>> -> memref<!tpu.dma_semaphore, #tpu.memory_space<semaphore_mem>>
    tpu.enqueue_dma source(%36 : memref<1x32xf32, #tpu.memory_space<any>>) target(%37 : memref<1x32xf32, #tpu.memory_space<vmem>>) target_semaphore(%39 : memref<!tpu.dma_semaphore, #tpu.memory_space<semaphore_mem>>)
    %c0_i32_24 = arith.constant 0 : i32
    %c0_i32_25 = arith.constant 0 : i32
    %40 = tpu.memref_slice %arg2[%0, %c0_i32_25] : memref<64x32xf32, #tpu.memory_space<any>> -> memref<1x32xf32, #tpu.memory_space<any>>
    %c0_i32_26 = arith.constant 0 : i32
    %c0_i32_27 = arith.constant 0 : i32
    %41 = tpu.memref_slice %arg4[%c0_i32_26, %c0_i32_27] : memref<8x32xf32, #tpu.memory_space<vmem>> -> memref<1x32xf32, #tpu.memory_space<vmem>>
    %42 = tpu.memref_slice %arg5[%c0_i32_24] : memref<8x!tpu.dma_semaphore, #tpu.memory_space<semaphore_mem>> -> memref<1x!tpu.dma_semaphore, #tpu.memory_space<semaphore_mem>>
    %43 = tpu.memref_squeeze %42 : memref<1x!tpu.dma_semaphore, #tpu.memory_space<semaphore_mem>> -> memref<!tpu.dma_semaphore, #tpu.memory_space<semaphore_mem>>
    tpu.wait_dma2 semaphore(%43 : memref<!tpu.dma_semaphore, #tpu.memory_space<semaphore_mem>>) src(%40 : memref<1x32xf32, #tpu.memory_space<any>>) dst(%41 : memref<1x32xf32, #tpu.memory_space<vmem>>)
    %c0_28 = arith.constant 0 : index
    %c0_29 = arith.constant 0 : index
    %44 = vector.load %arg4[%c0_28, %c0_29] : memref<8x32xf32, #tpu.memory_space<vmem>>, vector<1x32xf32>
    %cst = arith.constant 5.000000e-01 : f32
    %45 = vector.broadcast %cst : f32 to vector<1x32xf32>
    %46 = arith.mulf %44, %45 : vector<1x32xf32>
    %c0_30 = arith.constant 0 : index
    %c0_31 = arith.constant 0 : index
    %47 = vector.load %arg1[%c0_30, %c0_31] : memref<8x32xf32, #tpu.memory_space<vmem>>, vector<1x32xf32>
    %cst_32 = arith.constant 5.000000e-01 : f32
    %48 = vector.broadcast %cst_32 : f32 to vector<1x32xf32>
    %49 = arith.mulf %48, %47 : vector<1x32xf32>
    %50 = arith.addf %46, %49 : vector<1x32xf32>
    %51 = arith.mulf %50, %50 : vector<1x32xf32>
    %cst_33 = arith.constant dense<0.000000e+00> : vector<1xf32>
    %52 = vector.multi_reduction <add>, %51, %cst_33 [1] : vector<1x32xf32> to vector<1xf32>
    %53 = vector.shape_cast %52 : vector<1xf32> to vector<1x1xf32>
    %cst_34 = arith.constant 9.99999996E-13 : f32
    %54 = vector.broadcast %cst_34 : f32 to vector<1x1xf32>
    %55 = arith.addf %53, %54 : vector<1x1xf32>
    %56 = math.rsqrt %55 : vector<1x1xf32>
    %57 = vector.broadcast %56 : vector<1x1xf32> to vector<1x32xf32>
    %58 = arith.mulf %50, %57 : vector<1x32xf32>
    %c0_35 = arith.constant 0 : index
    %c0_36 = arith.constant 0 : index
    %59 = vector.load %arg4[%c0_35, %c0_36] : memref<8x32xf32, #tpu.memory_space<vmem>>, vector<1x32xf32>
    tpu.vector_store %arg4[%c0_35, %c0_36], %58 {strides = array<i32>} : memref<8x32xf32, #tpu.memory_space<vmem>>, vector<1x32xf32>,
    %c0_i32_37 = arith.constant 0 : i32
    %c0_i32_38 = arith.constant 0 : i32
    %c0_i32_39 = arith.constant 0 : i32
    %60 = tpu.memref_slice %arg4[%c0_i32_38, %c0_i32_39] : memref<8x32xf32, #tpu.memory_space<vmem>> -> memref<1x32xf32, #tpu.memory_space<vmem>>
    %c0_i32_40 = arith.constant 0 : i32
    %61 = tpu.memref_slice %arg3[%0, %c0_i32_40] : memref<64x32xf32, #tpu.memory_space<any>> -> memref<1x32xf32, #tpu.memory_space<any>>
    %62 = tpu.memref_slice %arg5[%c0_i32_37] : memref<8x!tpu.dma_semaphore, #tpu.memory_space<semaphore_mem>> -> memref<1x!tpu.dma_semaphore, #tpu.memory_space<semaphore_mem>>
    %63 = tpu.memref_squeeze %62 : memref<1x!tpu.dma_semaphore, #tpu.memory_space<semaphore_mem>> -> memref<!tpu.dma_semaphore, #tpu.memory_space<semaphore_mem>>
    tpu.enqueue_dma source(%60 : memref<1x32xf32, #tpu.memory_space<vmem>>) target(%61 : memref<1x32xf32, #tpu.memory_space<any>>) target_semaphore(%63 : memref<!tpu.dma_semaphore, #tpu.memory_space<semaphore_mem>>)
    %c1_i32_41 = arith.constant 1 : i32
    %c0_i32_42 = arith.constant 0 : i32
    %64 = tpu.memref_slice %arg2[%1, %c0_i32_42] : memref<64x32xf32, #tpu.memory_space<any>> -> memref<1x32xf32, #tpu.memory_space<any>>
    %c1_i32_43 = arith.constant 1 : i32
    %c0_i32_44 = arith.constant 0 : i32
    %65 = tpu.memref_slice %arg4[%c1_i32_43, %c0_i32_44] : memref<8x32xf32, #tpu.memory_space<vmem>> -> memref<1x32xf32, #tpu.memory_space<vmem>>
    %66 = tpu.memref_slice %arg5[%c1_i32_41] : memref<8x!tpu.dma_semaphore, #tpu.memory_space<semaphore_mem>> -> memref<1x!tpu.dma_semaphore, #tpu.memory_space<semaphore_mem>>
    %67 = tpu.memref_squeeze %66 : memref<1x!tpu.dma_semaphore, #tpu.memory_space<semaphore_mem>> -> memref<!tpu.dma_semaphore, #tpu.memory_space<semaphore_mem>>
    tpu.wait_dma2 semaphore(%67 : memref<!tpu.dma_semaphore, #tpu.memory_space<semaphore_mem>>) src(%64 : memref<1x32xf32, #tpu.memory_space<any>>) dst(%65 : memref<1x32xf32, #tpu.memory_space<vmem>>)
    %c1_45 = arith.constant 1 : index
    %c0_46 = arith.constant 0 : index
    %68 = vector.load %arg4[%c1_45, %c0_46] : memref<8x32xf32, #tpu.memory_space<vmem>>, vector<1x32xf32>
    %cst_47 = arith.constant 5.000000e-01 : f32
    %69 = vector.broadcast %cst_47 : f32 to vector<1x32xf32>
    %70 = arith.mulf %68, %69 : vector<1x32xf32>
    %c1_48 = arith.constant 1 : index
    %c0_49 = arith.constant 0 : index
    %71 = vector.load %arg1[%c1_48, %c0_49] : memref<8x32xf32, #tpu.memory_space<vmem>>, vector<1x32xf32>
    %cst_50 = arith.constant 5.000000e-01 : f32
    %72 = vector.broadcast %cst_50 : f32 to vector<1x32xf32>
    %73 = arith.mulf %72, %71 : vector<1x32xf32>
    %74 = arith.addf %70, %73 : vector<1x32xf32>
    %75 = arith.mulf %74, %74 : vector<1x32xf32>
    %cst_51 = arith.constant dense<0.000000e+00> : vector<1xf32>
    %76 = vector.multi_reduction <add>, %75, %cst_51 [1] : vector<1x32xf32> to vector<1xf32>
    %77 = vector.shape_cast %76 : vector<1xf32> to vector<1x1xf32>
    %cst_52 = arith.constant 9.99999996E-13 : f32
    %78 = vector.broadcast %cst_52 : f32 to vector<1x1xf32>
    %79 = arith.addf %77, %78 : vector<1x1xf32>
    %80 = math.rsqrt %79 : vector<1x1xf32>
    %81 = vector.broadcast %80 : vector<1x1xf32> to vector<1x32xf32>
    %82 = arith.mulf %74, %81 : vector<1x32xf32>
    %c1_53 = arith.constant 1 : index
    %c0_54 = arith.constant 0 : index
    %83 = vector.load %arg4[%c1_53, %c0_54] : memref<8x32xf32, #tpu.memory_space<vmem>>, vector<1x32xf32>
    tpu.vector_store %arg4[%c1_53, %c0_54], %82 {strides = array<i32>} : memref<8x32xf32, #tpu.memory_space<vmem>>, vector<1x32xf32>,
    %c1_i32_55 = arith.constant 1 : i32
    %c1_i32_56 = arith.constant 1 : i32
    %c0_i32_57 = arith.constant 0 : i32
    %84 = tpu.memref_slice %arg4[%c1_i32_56, %c0_i32_57] : memref<8x32xf32, #tpu.memory_space<vmem>> -> memref<1x32xf32, #tpu.memory_space<vmem>>
    %c0_i32_58 = arith.constant 0 : i32
    %85 = tpu.memref_slice %arg3[%1, %c0_i32_58] : memref<64x32xf32, #tpu.memory_space<any>> -> memref<1x32xf32, #tpu.memory_space<any>>
    %86 = tpu.memref_slice %arg5[%c1_i32_55] : memref<8x!tpu.dma_semaphore, #tpu.memory_space<semaphore_mem>> -> memref<1x!tpu.dma_semaphore, #tpu.memory_space<semaphore_mem>>
    %87 = tpu.memref_squeeze %86 : memref<1x!tpu.dma_semaphore, #tpu.memory_space<semaphore_mem>> -> memref<!tpu.dma_semaphore, #tpu.memory_space<semaphore_mem>>
    tpu.enqueue_dma source(%84 : memref<1x32xf32, #tpu.memory_space<vmem>>) target(%85 : memref<1x32xf32, #tpu.memory_space<any>>) target_semaphore(%87 : memref<!tpu.dma_semaphore, #tpu.memory_space<semaphore_mem>>)
    %c2_i32_59 = arith.constant 2 : i32
    %c0_i32_60 = arith.constant 0 : i32
    %88 = tpu.memref_slice %arg2[%2, %c0_i32_60] : memref<64x32xf32, #tpu.memory_space<any>> -> memref<1x32xf32, #tpu.memory_space<any>>
    %c2_i32_61 = arith.constant 2 : i32
    %c0_i32_62 = arith.constant 0 : i32
    %89 = tpu.memref_slice %arg4[%c2_i32_61, %c0_i32_62] : memref<8x32xf32, #tpu.memory_space<vmem>> -> memref<1x32xf32, #tpu.memory_space<vmem>>
    %90 = tpu.memref_slice %arg5[%c2_i32_59] : memref<8x!tpu.dma_semaphore, #tpu.memory_space<semaphore_mem>> -> memref<1x!tpu.dma_semaphore, #tpu.memory_space<semaphore_mem>>
    %91 = tpu.memref_squeeze %90 : memref<1x!tpu.dma_semaphore, #tpu.memory_space<semaphore_mem>> -> memref<!tpu.dma_semaphore, #tpu.memory_space<semaphore_mem>>
    tpu.wait_dma2 semaphore(%91 : memref<!tpu.dma_semaphore, #tpu.memory_space<semaphore_mem>>) src(%88 : memref<1x32xf32, #tpu.memory_space<any>>) dst(%89 : memref<1x32xf32, #tpu.memory_space<vmem>>)
    %c2_63 = arith.constant 2 : index
    %c0_64 = arith.constant 0 : index
    %92 = vector.load %arg4[%c2_63, %c0_64] : memref<8x32xf32, #tpu.memory_space<vmem>>, vector<1x32xf32>
    %cst_65 = arith.constant 5.000000e-01 : f32
    %93 = vector.broadcast %cst_65 : f32 to vector<1x32xf32>
    %94 = arith.mulf %92, %93 : vector<1x32xf32>
    %c2_66 = arith.constant 2 : index
    %c0_67 = arith.constant 0 : index
    %95 = vector.load %arg1[%c2_66, %c0_67] : memref<8x32xf32, #tpu.memory_space<vmem>>, vector<1x32xf32>
    %cst_68 = arith.constant 5.000000e-01 : f32
    %96 = vector.broadcast %cst_68 : f32 to vector<1x32xf32>
    %97 = arith.mulf %96, %95 : vector<1x32xf32>
    %98 = arith.addf %94, %97 : vector<1x32xf32>
    %99 = arith.mulf %98, %98 : vector<1x32xf32>
    %cst_69 = arith.constant dense<0.000000e+00> : vector<1xf32>
    %100 = vector.multi_reduction <add>, %99, %cst_69 [1] : vector<1x32xf32> to vector<1xf32>
    %101 = vector.shape_cast %100 : vector<1xf32> to vector<1x1xf32>
    %cst_70 = arith.constant 9.99999996E-13 : f32
    %102 = vector.broadcast %cst_70 : f32 to vector<1x1xf32>
    %103 = arith.addf %101, %102 : vector<1x1xf32>
    %104 = math.rsqrt %103 : vector<1x1xf32>
    %105 = vector.broadcast %104 : vector<1x1xf32> to vector<1x32xf32>
    %106 = arith.mulf %98, %105 : vector<1x32xf32>
    %c2_71 = arith.constant 2 : index
    %c0_72 = arith.constant 0 : index
    %107 = vector.load %arg4[%c2_71, %c0_72] : memref<8x32xf32, #tpu.memory_space<vmem>>, vector<1x32xf32>
    tpu.vector_store %arg4[%c2_71, %c0_72], %106 {strides = array<i32>} : memref<8x32xf32, #tpu.memory_space<vmem>>, vector<1x32xf32>,
    %c2_i32_73 = arith.constant 2 : i32
    %c2_i32_74 = arith.constant 2 : i32
    %c0_i32_75 = arith.constant 0 : i32
    %108 = tpu.memref_slice %arg4[%c2_i32_74, %c0_i32_75] : memref<8x32xf32, #tpu.memory_space<vmem>> -> memref<1x32xf32, #tpu.memory_space<vmem>>
    %c0_i32_76 = arith.constant 0 : i32
    %109 = tpu.memref_slice %arg3[%2, %c0_i32_76] : memref<64x32xf32, #tpu.memory_space<any>> -> memref<1x32xf32, #tpu.memory_space<any>>
    %110 = tpu.memref_slice %arg5[%c2_i32_73] : memref<8x!tpu.dma_semaphore, #tpu.memory_space<semaphore_mem>> -> memref<1x!tpu.dma_semaphore, #tpu.memory_space<semaphore_mem>>
    %111 = tpu.memref_squeeze %110 : memref<1x!tpu.dma_semaphore, #tpu.memory_space<semaphore_mem>> -> memref<!tpu.dma_semaphore, #tpu.memory_space<semaphore_mem>>
    tpu.enqueue_dma source(%108 : memref<1x32xf32, #tpu.memory_space<vmem>>) target(%109 : memref<1x32xf32, #tpu.memory_space<any>>) target_semaphore(%111 : memref<!tpu.dma_semaphore, #tpu.memory_space<semaphore_mem>>)
    %c3_i32_77 = arith.constant 3 : i32
    %c0_i32_78 = arith.constant 0 : i32
    %112 = tpu.memref_slice %arg2[%3, %c0_i32_78] : memref<64x32xf32, #tpu.memory_space<any>> -> memref<1x32xf32, #tpu.memory_space<any>>
    %c3_i32_79 = arith.constant 3 : i32
    %c0_i32_80 = arith.constant 0 : i32
    %113 = tpu.memref_slice %arg4[%c3_i32_79, %c0_i32_80] : memref<8x32xf32, #tpu.memory_space<vmem>> -> memref<1x32xf32, #tpu.memory_space<vmem>>
    %114 = tpu.memref_slice %arg5[%c3_i32_77] : memref<8x!tpu.dma_semaphore, #tpu.memory_space<semaphore_mem>> -> memref<1x!tpu.dma_semaphore, #tpu.memory_space<semaphore_mem>>
    %115 = tpu.memref_squeeze %114 : memref<1x!tpu.dma_semaphore, #tpu.memory_space<semaphore_mem>> -> memref<!tpu.dma_semaphore, #tpu.memory_space<semaphore_mem>>
    tpu.wait_dma2 semaphore(%115 : memref<!tpu.dma_semaphore, #tpu.memory_space<semaphore_mem>>) src(%112 : memref<1x32xf32, #tpu.memory_space<any>>) dst(%113 : memref<1x32xf32, #tpu.memory_space<vmem>>)
    %c3_81 = arith.constant 3 : index
    %c0_82 = arith.constant 0 : index
    %116 = vector.load %arg4[%c3_81, %c0_82] : memref<8x32xf32, #tpu.memory_space<vmem>>, vector<1x32xf32>
    %cst_83 = arith.constant 5.000000e-01 : f32
    %117 = vector.broadcast %cst_83 : f32 to vector<1x32xf32>
    %118 = arith.mulf %116, %117 : vector<1x32xf32>
    %c3_84 = arith.constant 3 : index
    %c0_85 = arith.constant 0 : index
    %119 = vector.load %arg1[%c3_84, %c0_85] : memref<8x32xf32, #tpu.memory_space<vmem>>, vector<1x32xf32>
    %cst_86 = arith.constant 5.000000e-01 : f32
    %120 = vector.broadcast %cst_86 : f32 to vector<1x32xf32>
    %121 = arith.mulf %120, %119 : vector<1x32xf32>
    %122 = arith.addf %118, %121 : vector<1x32xf32>
    %123 = arith.mulf %122, %122 : vector<1x32xf32>
    %cst_87 = arith.constant dense<0.000000e+00> : vector<1xf32>
    %124 = vector.multi_reduction <add>, %123, %cst_87 [1] : vector<1x32xf32> to vector<1xf32>
    %125 = vector.shape_cast %124 : vector<1xf32> to vector<1x1xf32>
    %cst_88 = arith.constant 9.99999996E-13 : f32
    %126 = vector.broadcast %cst_88 : f32 to vector<1x1xf32>
    %127 = arith.addf %125, %126 : vector<1x1xf32>
    %128 = math.rsqrt %127 : vector<1x1xf32>
    %129 = vector.broadcast %128 : vector<1x1xf32> to vector<1x32xf32>
    %130 = arith.mulf %122, %129 : vector<1x32xf32>
    %c3_89 = arith.constant 3 : index
    %c0_90 = arith.constant 0 : index
    %131 = vector.load %arg4[%c3_89, %c0_90] : memref<8x32xf32, #tpu.memory_space<vmem>>, vector<1x32xf32>
    tpu.vector_store %arg4[%c3_89, %c0_90], %130 {strides = array<i32>} : memref<8x32xf32, #tpu.memory_space<vmem>>, vector<1x32xf32>,
    %c3_i32_91 = arith.constant 3 : i32
    %c3_i32_92 = arith.constant 3 : i32
    %c0_i32_93 = arith.constant 0 : i32
    %132 = tpu.memref_slice %arg4[%c3_i32_92, %c0_i32_93] : memref<8x32xf32, #tpu.memory_space<vmem>> -> memref<1x32xf32, #tpu.memory_space<vmem>>
    %c0_i32_94 = arith.constant 0 : i32
    %133 = tpu.memref_slice %arg3[%3, %c0_i32_94] : memref<64x32xf32, #tpu.memory_space<any>> -> memref<1x32xf32, #tpu.memory_space<any>>
    %134 = tpu.memref_slice %arg5[%c3_i32_91] : memref<8x!tpu.dma_semaphore, #tpu.memory_space<semaphore_mem>> -> memref<1x!tpu.dma_semaphore, #tpu.memory_space<semaphore_mem>>
    %135 = tpu.memref_squeeze %134 : memref<1x!tpu.dma_semaphore, #tpu.memory_space<semaphore_mem>> -> memref<!tpu.dma_semaphore, #tpu.memory_space<semaphore_mem>>
    tpu.enqueue_dma source(%132 : memref<1x32xf32, #tpu.memory_space<vmem>>) target(%133 : memref<1x32xf32, #tpu.memory_space<any>>) target_semaphore(%135 : memref<!tpu.dma_semaphore, #tpu.memory_space<semaphore_mem>>)
    %c4_i32_95 = arith.constant 4 : i32
    %c0_i32_96 = arith.constant 0 : i32
    %136 = tpu.memref_slice %arg2[%4, %c0_i32_96] : memref<64x32xf32, #tpu.memory_space<any>> -> memref<1x32xf32, #tpu.memory_space<any>>
    %c4_i32_97 = arith.constant 4 : i32
    %c0_i32_98 = arith.constant 0 : i32
    %137 = tpu.memref_slice %arg4[%c4_i32_97, %c0_i32_98] : memref<8x32xf32, #tpu.memory_space<vmem>> -> memref<1x32xf32, #tpu.memory_space<vmem>>
    %138 = tpu.memref_slice %arg5[%c4_i32_95] : memref<8x!tpu.dma_semaphore, #tpu.memory_space<semaphore_mem>> -> memref<1x!tpu.dma_semaphore, #tpu.memory_space<semaphore_mem>>
    %139 = tpu.memref_squeeze %138 : memref<1x!tpu.dma_semaphore, #tpu.memory_space<semaphore_mem>> -> memref<!tpu.dma_semaphore, #tpu.memory_space<semaphore_mem>>
    tpu.wait_dma2 semaphore(%139 : memref<!tpu.dma_semaphore, #tpu.memory_space<semaphore_mem>>) src(%136 : memref<1x32xf32, #tpu.memory_space<any>>) dst(%137 : memref<1x32xf32, #tpu.memory_space<vmem>>)
    %c4_99 = arith.constant 4 : index
    %c0_100 = arith.constant 0 : index
    %140 = vector.load %arg4[%c4_99, %c0_100] : memref<8x32xf32, #tpu.memory_space<vmem>>, vector<1x32xf32>
    %cst_101 = arith.constant 5.000000e-01 : f32
    %141 = vector.broadcast %cst_101 : f32 to vector<1x32xf32>
    %142 = arith.mulf %140, %141 : vector<1x32xf32>
    %c4_102 = arith.constant 4 : index
    %c0_103 = arith.constant 0 : index
    %143 = vector.load %arg1[%c4_102, %c0_103] : memref<8x32xf32, #tpu.memory_space<vmem>>, vector<1x32xf32>
    %cst_104 = arith.constant 5.000000e-01 : f32
    %144 = vector.broadcast %cst_104 : f32 to vector<1x32xf32>
    %145 = arith.mulf %144, %143 : vector<1x32xf32>
    %146 = arith.addf %142, %145 : vector<1x32xf32>
    %147 = arith.mulf %146, %146 : vector<1x32xf32>
    %cst_105 = arith.constant dense<0.000000e+00> : vector<1xf32>
    %148 = vector.multi_reduction <add>, %147, %cst_105 [1] : vector<1x32xf32> to vector<1xf32>
    %149 = vector.shape_cast %148 : vector<1xf32> to vector<1x1xf32>
    %cst_106 = arith.constant 9.99999996E-13 : f32
    %150 = vector.broadcast %cst_106 : f32 to vector<1x1xf32>
    %151 = arith.addf %149, %150 : vector<1x1xf32>
    %152 = math.rsqrt %151 : vector<1x1xf32>
    %153 = vector.broadcast %152 : vector<1x1xf32> to vector<1x32xf32>
    %154 = arith.mulf %146, %153 : vector<1x32xf32>
    %c4_107 = arith.constant 4 : index
    %c0_108 = arith.constant 0 : index
    %155 = vector.load %arg4[%c4_107, %c0_108] : memref<8x32xf32, #tpu.memory_space<vmem>>, vector<1x32xf32>
    tpu.vector_store %arg4[%c4_107, %c0_108], %154 {strides = array<i32>} : memref<8x32xf32, #tpu.memory_space<vmem>>, vector<1x32xf32>,
    %c4_i32_109 = arith.constant 4 : i32
    %c4_i32_110 = arith.constant 4 : i32
    %c0_i32_111 = arith.constant 0 : i32
    %156 = tpu.memref_slice %arg4[%c4_i32_110, %c0_i32_111] : memref<8x32xf32, #tpu.memory_space<vmem>> -> memref<1x32xf32, #tpu.memory_space<vmem>>
    %c0_i32_112 = arith.constant 0 : i32
    %157 = tpu.memref_slice %arg3[%4, %c0_i32_112] : memref<64x32xf32, #tpu.memory_space<any>> -> memref<1x32xf32, #tpu.memory_space<any>>
    %158 = tpu.memref_slice %arg5[%c4_i32_109] : memref<8x!tpu.dma_semaphore, #tpu.memory_space<semaphore_mem>> -> memref<1x!tpu.dma_semaphore, #tpu.memory_space<semaphore_mem>>
    %159 = tpu.memref_squeeze %158 : memref<1x!tpu.dma_semaphore, #tpu.memory_space<semaphore_mem>> -> memref<!tpu.dma_semaphore, #tpu.memory_space<semaphore_mem>>
    tpu.enqueue_dma source(%156 : memref<1x32xf32, #tpu.memory_space<vmem>>) target(%157 : memref<1x32xf32, #tpu.memory_space<any>>) target_semaphore(%159 : memref<!tpu.dma_semaphore, #tpu.memory_space<semaphore_mem>>)
    %c5_i32_113 = arith.constant 5 : i32
    %c0_i32_114 = arith.constant 0 : i32
    %160 = tpu.memref_slice %arg2[%5, %c0_i32_114] : memref<64x32xf32, #tpu.memory_space<any>> -> memref<1x32xf32, #tpu.memory_space<any>>
    %c5_i32_115 = arith.constant 5 : i32
    %c0_i32_116 = arith.constant 0 : i32
    %161 = tpu.memref_slice %arg4[%c5_i32_115, %c0_i32_116] : memref<8x32xf32, #tpu.memory_space<vmem>> -> memref<1x32xf32, #tpu.memory_space<vmem>>
    %162 = tpu.memref_slice %arg5[%c5_i32_113] : memref<8x!tpu.dma_semaphore, #tpu.memory_space<semaphore_mem>> -> memref<1x!tpu.dma_semaphore, #tpu.memory_space<semaphore_mem>>
    %163 = tpu.memref_squeeze %162 : memref<1x!tpu.dma_semaphore, #tpu.memory_space<semaphore_mem>> -> memref<!tpu.dma_semaphore, #tpu.memory_space<semaphore_mem>>
    tpu.wait_dma2 semaphore(%163 : memref<!tpu.dma_semaphore, #tpu.memory_space<semaphore_mem>>) src(%160 : memref<1x32xf32, #tpu.memory_space<any>>) dst(%161 : memref<1x32xf32, #tpu.memory_space<vmem>>)
    %c5_117 = arith.constant 5 : index
    %c0_118 = arith.constant 0 : index
    %164 = vector.load %arg4[%c5_117, %c0_118] : memref<8x32xf32, #tpu.memory_space<vmem>>, vector<1x32xf32>
    %cst_119 = arith.constant 5.000000e-01 : f32
    %165 = vector.broadcast %cst_119 : f32 to vector<1x32xf32>
    %166 = arith.mulf %164, %165 : vector<1x32xf32>
    %c5_120 = arith.constant 5 : index
    %c0_121 = arith.constant 0 : index
    %167 = vector.load %arg1[%c5_120, %c0_121] : memref<8x32xf32, #tpu.memory_space<vmem>>, vector<1x32xf32>
    %cst_122 = arith.constant 5.000000e-01 : f32
    %168 = vector.broadcast %cst_122 : f32 to vector<1x32xf32>
    %169 = arith.mulf %168, %167 : vector<1x32xf32>
    %170 = arith.addf %166, %169 : vector<1x32xf32>
    %171 = arith.mulf %170, %170 : vector<1x32xf32>
    %cst_123 = arith.constant dense<0.000000e+00> : vector<1xf32>
    %172 = vector.multi_reduction <add>, %171, %cst_123 [1] : vector<1x32xf32> to vector<1xf32>
    %173 = vector.shape_cast %172 : vector<1xf32> to vector<1x1xf32>
    %cst_124 = arith.constant 9.99999996E-13 : f32
    %174 = vector.broadcast %cst_124 : f32 to vector<1x1xf32>
    %175 = arith.addf %173, %174 : vector<1x1xf32>
    %176 = math.rsqrt %175 : vector<1x1xf32>
    %177 = vector.broadcast %176 : vector<1x1xf32> to vector<1x32xf32>
    %178 = arith.mulf %170, %177 : vector<1x32xf32>
    %c5_125 = arith.constant 5 : index
    %c0_126 = arith.constant 0 : index
    %179 = vector.load %arg4[%c5_125, %c0_126] : memref<8x32xf32, #tpu.memory_space<vmem>>, vector<1x32xf32>
    tpu.vector_store %arg4[%c5_125, %c0_126], %178 {strides = array<i32>} : memref<8x32xf32, #tpu.memory_space<vmem>>, vector<1x32xf32>,
    %c5_i32_127 = arith.constant 5 : i32
    %c5_i32_128 = arith.constant 5 : i32
    %c0_i32_129 = arith.constant 0 : i32
    %180 = tpu.memref_slice %arg4[%c5_i32_128, %c0_i32_129] : memref<8x32xf32, #tpu.memory_space<vmem>> -> memref<1x32xf32, #tpu.memory_space<vmem>>
    %c0_i32_130 = arith.constant 0 : i32
    %181 = tpu.memref_slice %arg3[%5, %c0_i32_130] : memref<64x32xf32, #tpu.memory_space<any>> -> memref<1x32xf32, #tpu.memory_space<any>>
    %182 = tpu.memref_slice %arg5[%c5_i32_127] : memref<8x!tpu.dma_semaphore, #tpu.memory_space<semaphore_mem>> -> memref<1x!tpu.dma_semaphore, #tpu.memory_space<semaphore_mem>>
    %183 = tpu.memref_squeeze %182 : memref<1x!tpu.dma_semaphore, #tpu.memory_space<semaphore_mem>> -> memref<!tpu.dma_semaphore, #tpu.memory_space<semaphore_mem>>
    tpu.enqueue_dma source(%180 : memref<1x32xf32, #tpu.memory_space<vmem>>) target(%181 : memref<1x32xf32, #tpu.memory_space<any>>) target_semaphore(%183 : memref<!tpu.dma_semaphore, #tpu.memory_space<semaphore_mem>>)
    %c6_i32_131 = arith.constant 6 : i32
    %c0_i32_132 = arith.constant 0 : i32
    %184 = tpu.memref_slice %arg2[%6, %c0_i32_132] : memref<64x32xf32, #tpu.memory_space<any>> -> memref<1x32xf32, #tpu.memory_space<any>>
    %c6_i32_133 = arith.constant 6 : i32
    %c0_i32_134 = arith.constant 0 : i32
    %185 = tpu.memref_slice %arg4[%c6_i32_133, %c0_i32_134] : memref<8x32xf32, #tpu.memory_space<vmem>> -> memref<1x32xf32, #tpu.memory_space<vmem>>
    %186 = tpu.memref_slice %arg5[%c6_i32_131] : memref<8x!tpu.dma_semaphore, #tpu.memory_space<semaphore_mem>> -> memref<1x!tpu.dma_semaphore, #tpu.memory_space<semaphore_mem>>
    %187 = tpu.memref_squeeze %186 : memref<1x!tpu.dma_semaphore, #tpu.memory_space<semaphore_mem>> -> memref<!tpu.dma_semaphore, #tpu.memory_space<semaphore_mem>>
    tpu.wait_dma2 semaphore(%187 : memref<!tpu.dma_semaphore, #tpu.memory_space<semaphore_mem>>) src(%184 : memref<1x32xf32, #tpu.memory_space<any>>) dst(%185 : memref<1x32xf32, #tpu.memory_space<vmem>>)
    %c6_135 = arith.constant 6 : index
    %c0_136 = arith.constant 0 : index
    %188 = vector.load %arg4[%c6_135, %c0_136] : memref<8x32xf32, #tpu.memory_space<vmem>>, vector<1x32xf32>
    %cst_137 = arith.constant 5.000000e-01 : f32
    %189 = vector.broadcast %cst_137 : f32 to vector<1x32xf32>
    %190 = arith.mulf %188, %189 : vector<1x32xf32>
    %c6_138 = arith.constant 6 : index
    %c0_139 = arith.constant 0 : index
    %191 = vector.load %arg1[%c6_138, %c0_139] : memref<8x32xf32, #tpu.memory_space<vmem>>, vector<1x32xf32>
    %cst_140 = arith.constant 5.000000e-01 : f32
    %192 = vector.broadcast %cst_140 : f32 to vector<1x32xf32>
    %193 = arith.mulf %192, %191 : vector<1x32xf32>
    %194 = arith.addf %190, %193 : vector<1x32xf32>
    %195 = arith.mulf %194, %194 : vector<1x32xf32>
    %cst_141 = arith.constant dense<0.000000e+00> : vector<1xf32>
    %196 = vector.multi_reduction <add>, %195, %cst_141 [1] : vector<1x32xf32> to vector<1xf32>
    %197 = vector.shape_cast %196 : vector<1xf32> to vector<1x1xf32>
    %cst_142 = arith.constant 9.99999996E-13 : f32
    %198 = vector.broadcast %cst_142 : f32 to vector<1x1xf32>
    %199 = arith.addf %197, %198 : vector<1x1xf32>
    %200 = math.rsqrt %199 : vector<1x1xf32>
    %201 = vector.broadcast %200 : vector<1x1xf32> to vector<1x32xf32>
    %202 = arith.mulf %194, %201 : vector<1x32xf32>
    %c6_143 = arith.constant 6 : index
    %c0_144 = arith.constant 0 : index
    %203 = vector.load %arg4[%c6_143, %c0_144] : memref<8x32xf32, #tpu.memory_space<vmem>>, vector<1x32xf32>
    tpu.vector_store %arg4[%c6_143, %c0_144], %202 {strides = array<i32>} : memref<8x32xf32, #tpu.memory_space<vmem>>, vector<1x32xf32>,
    %c6_i32_145 = arith.constant 6 : i32
    %c6_i32_146 = arith.constant 6 : i32
    %c0_i32_147 = arith.constant 0 : i32
    %204 = tpu.memref_slice %arg4[%c6_i32_146, %c0_i32_147] : memref<8x32xf32, #tpu.memory_space<vmem>> -> memref<1x32xf32, #tpu.memory_space<vmem>>
    %c0_i32_148 = arith.constant 0 : i32
    %205 = tpu.memref_slice %arg3[%6, %c0_i32_148] : memref<64x32xf32, #tpu.memory_space<any>> -> memref<1x32xf32, #tpu.memory_space<any>>
    %206 = tpu.memref_slice %arg5[%c6_i32_145] : memref<8x!tpu.dma_semaphore, #tpu.memory_space<semaphore_mem>> -> memref<1x!tpu.dma_semaphore, #tpu.memory_space<semaphore_mem>>
    %207 = tpu.memref_squeeze %206 : memref<1x!tpu.dma_semaphore, #tpu.memory_space<semaphore_mem>> -> memref<!tpu.dma_semaphore, #tpu.memory_space<semaphore_mem>>
    tpu.enqueue_dma source(%204 : memref<1x32xf32, #tpu.memory_space<vmem>>) target(%205 : memref<1x32xf32, #tpu.memory_space<any>>) target_semaphore(%207 : memref<!tpu.dma_semaphore, #tpu.memory_space<semaphore_mem>>)
    %c7_i32_149 = arith.constant 7 : i32
    %c0_i32_150 = arith.constant 0 : i32
    %208 = tpu.memref_slice %arg2[%7, %c0_i32_150] : memref<64x32xf32, #tpu.memory_space<any>> -> memref<1x32xf32, #tpu.memory_space<any>>
    %c7_i32_151 = arith.constant 7 : i32
    %c0_i32_152 = arith.constant 0 : i32
    %209 = tpu.memref_slice %arg4[%c7_i32_151, %c0_i32_152] : memref<8x32xf32, #tpu.memory_space<vmem>> -> memref<1x32xf32, #tpu.memory_space<vmem>>
    %210 = tpu.memref_slice %arg5[%c7_i32_149] : memref<8x!tpu.dma_semaphore, #tpu.memory_space<semaphore_mem>> -> memref<1x!tpu.dma_semaphore, #tpu.memory_space<semaphore_mem>>
    %211 = tpu.memref_squeeze %210 : memref<1x!tpu.dma_semaphore, #tpu.memory_space<semaphore_mem>> -> memref<!tpu.dma_semaphore, #tpu.memory_space<semaphore_mem>>
    tpu.wait_dma2 semaphore(%211 : memref<!tpu.dma_semaphore, #tpu.memory_space<semaphore_mem>>) src(%208 : memref<1x32xf32, #tpu.memory_space<any>>) dst(%209 : memref<1x32xf32, #tpu.memory_space<vmem>>)
    %c7_153 = arith.constant 7 : index
    %c0_154 = arith.constant 0 : index
    %212 = vector.load %arg4[%c7_153, %c0_154] : memref<8x32xf32, #tpu.memory_space<vmem>>, vector<1x32xf32>
    %cst_155 = arith.constant 5.000000e-01 : f32
    %213 = vector.broadcast %cst_155 : f32 to vector<1x32xf32>
    %214 = arith.mulf %212, %213 : vector<1x32xf32>
    %c7_156 = arith.constant 7 : index
    %c0_157 = arith.constant 0 : index
    %215 = vector.load %arg1[%c7_156, %c0_157] : memref<8x32xf32, #tpu.memory_space<vmem>>, vector<1x32xf32>
    %cst_158 = arith.constant 5.000000e-01 : f32
    %216 = vector.broadcast %cst_158 : f32 to vector<1x32xf32>
    %217 = arith.mulf %216, %215 : vector<1x32xf32>
    %218 = arith.addf %214, %217 : vector<1x32xf32>
    %219 = arith.mulf %218, %218 : vector<1x32xf32>
    %cst_159 = arith.constant dense<0.000000e+00> : vector<1xf32>
    %220 = vector.multi_reduction <add>, %219, %cst_159 [1] : vector<1x32xf32> to vector<1xf32>
    %221 = vector.shape_cast %220 : vector<1xf32> to vector<1x1xf32>
    %cst_160 = arith.constant 9.99999996E-13 : f32
    %222 = vector.broadcast %cst_160 : f32 to vector<1x1xf32>
    %223 = arith.addf %221, %222 : vector<1x1xf32>
    %224 = math.rsqrt %223 : vector<1x1xf32>
    %225 = vector.broadcast %224 : vector<1x1xf32> to vector<1x32xf32>
    %226 = arith.mulf %218, %225 : vector<1x32xf32>
    %c7_161 = arith.constant 7 : index
    %c0_162 = arith.constant 0 : index
    %227 = vector.load %arg4[%c7_161, %c0_162] : memref<8x32xf32, #tpu.memory_space<vmem>>, vector<1x32xf32>
    tpu.vector_store %arg4[%c7_161, %c0_162], %226 {strides = array<i32>} : memref<8x32xf32, #tpu.memory_space<vmem>>, vector<1x32xf32>,
    %c7_i32_163 = arith.constant 7 : i32
    %c7_i32_164 = arith.constant 7 : i32
    %c0_i32_165 = arith.constant 0 : i32
    %228 = tpu.memref_slice %arg4[%c7_i32_164, %c0_i32_165] : memref<8x32xf32, #tpu.memory_space<vmem>> -> memref<1x32xf32, #tpu.memory_space<vmem>>
    %c0_i32_166 = arith.constant 0 : i32
    %229 = tpu.memref_slice %arg3[%7, %c0_i32_166] : memref<64x32xf32, #tpu.memory_space<any>> -> memref<1x32xf32, #tpu.memory_space<any>>
    %230 = tpu.memref_slice %arg5[%c7_i32_163] : memref<8x!tpu.dma_semaphore, #tpu.memory_space<semaphore_mem>> -> memref<1x!tpu.dma_semaphore, #tpu.memory_space<semaphore_mem>>
    %231 = tpu.memref_squeeze %230 : memref<1x!tpu.dma_semaphore, #tpu.memory_space<semaphore_mem>> -> memref<!tpu.dma_semaphore, #tpu.memory_space<semaphore_mem>>
    tpu.enqueue_dma source(%228 : memref<1x32xf32, #tpu.memory_space<vmem>>) target(%229 : memref<1x32xf32, #tpu.memory_space<any>>) target_semaphore(%231 : memref<!tpu.dma_semaphore, #tpu.memory_space<semaphore_mem>>)
    %c0_i32_167 = arith.constant 0 : i32
    %c0_i32_168 = arith.constant 0 : i32
    %c0_i32_169 = arith.constant 0 : i32
    %232 = tpu.memref_slice %arg4[%c0_i32_168, %c0_i32_169] : memref<8x32xf32, #tpu.memory_space<vmem>> -> memref<1x32xf32, #tpu.memory_space<vmem>>
    %c0_i32_170 = arith.constant 0 : i32
    %233 = tpu.memref_slice %arg3[%0, %c0_i32_170] : memref<64x32xf32, #tpu.memory_space<any>> -> memref<1x32xf32, #tpu.memory_space<any>>
    %234 = tpu.memref_slice %arg5[%c0_i32_167] : memref<8x!tpu.dma_semaphore, #tpu.memory_space<semaphore_mem>> -> memref<1x!tpu.dma_semaphore, #tpu.memory_space<semaphore_mem>>
    %235 = tpu.memref_squeeze %234 : memref<1x!tpu.dma_semaphore, #tpu.memory_space<semaphore_mem>> -> memref<!tpu.dma_semaphore, #tpu.memory_space<semaphore_mem>>
    tpu.wait_dma2 semaphore(%235 : memref<!tpu.dma_semaphore, #tpu.memory_space<semaphore_mem>>) src(%232 : memref<1x32xf32, #tpu.memory_space<vmem>>) dst(%233 : memref<1x32xf32, #tpu.memory_space<any>>)
    %c1_i32_171 = arith.constant 1 : i32
    %c1_i32_172 = arith.constant 1 : i32
    %c0_i32_173 = arith.constant 0 : i32
    %236 = tpu.memref_slice %arg4[%c1_i32_172, %c0_i32_173] : memref<8x32xf32, #tpu.memory_space<vmem>> -> memref<1x32xf32, #tpu.memory_space<vmem>>
    %c0_i32_174 = arith.constant 0 : i32
    %237 = tpu.memref_slice %arg3[%1, %c0_i32_174] : memref<64x32xf32, #tpu.memory_space<any>> -> memref<1x32xf32, #tpu.memory_space<any>>
    %238 = tpu.memref_slice %arg5[%c1_i32_171] : memref<8x!tpu.dma_semaphore, #tpu.memory_space<semaphore_mem>> -> memref<1x!tpu.dma_semaphore, #tpu.memory_space<semaphore_mem>>
    %239 = tpu.memref_squeeze %238 : memref<1x!tpu.dma_semaphore, #tpu.memory_space<semaphore_mem>> -> memref<!tpu.dma_semaphore, #tpu.memory_space<semaphore_mem>>
    tpu.wait_dma2 semaphore(%239 : memref<!tpu.dma_semaphore, #tpu.memory_space<semaphore_mem>>) src(%236 : memref<1x32xf32, #tpu.memory_space<vmem>>) dst(%237 : memref<1x32xf32, #tpu.memory_space<any>>)
    %c2_i32_175 = arith.constant 2 : i32
    %c2_i32_176 = arith.constant 2 : i32
    %c0_i32_177 = arith.constant 0 : i32
    %240 = tpu.memref_slice %arg4[%c2_i32_176, %c0_i32_177] : memref<8x32xf32, #tpu.memory_space<vmem>> -> memref<1x32xf32, #tpu.memory_space<vmem>>
    %c0_i32_178 = arith.constant 0 : i32
    %241 = tpu.memref_slice %arg3[%2, %c0_i32_178] : memref<64x32xf32, #tpu.memory_space<any>> -> memref<1x32xf32, #tpu.memory_space<any>>
    %242 = tpu.memref_slice %arg5[%c2_i32_175] : memref<8x!tpu.dma_semaphore, #tpu.memory_space<semaphore_mem>> -> memref<1x!tpu.dma_semaphore, #tpu.memory_space<semaphore_mem>>
    %243 = tpu.memref_squeeze %242 : memref<1x!tpu.dma_semaphore, #tpu.memory_space<semaphore_mem>> -> memref<!tpu.dma_semaphore, #tpu.memory_space<semaphore_mem>>
    tpu.wait_dma2 semaphore(%243 : memref<!tpu.dma_semaphore, #tpu.memory_space<semaphore_mem>>) src(%240 : memref<1x32xf32, #tpu.memory_space<vmem>>) dst(%241 : memref<1x32xf32, #tpu.memory_space<any>>)
    %c3_i32_179 = arith.constant 3 : i32
    %c3_i32_180 = arith.constant 3 : i32
    %c0_i32_181 = arith.constant 0 : i32
    %244 = tpu.memref_slice %arg4[%c3_i32_180, %c0_i32_181] : memref<8x32xf32, #tpu.memory_space<vmem>> -> memref<1x32xf32, #tpu.memory_space<vmem>>
    %c0_i32_182 = arith.constant 0 : i32
    %245 = tpu.memref_slice %arg3[%3, %c0_i32_182] : memref<64x32xf32, #tpu.memory_space<any>> -> memref<1x32xf32, #tpu.memory_space<any>>
    %246 = tpu.memref_slice %arg5[%c3_i32_179] : memref<8x!tpu.dma_semaphore, #tpu.memory_space<semaphore_mem>> -> memref<1x!tpu.dma_semaphore, #tpu.memory_space<semaphore_mem>>
    %247 = tpu.memref_squeeze %246 : memref<1x!tpu.dma_semaphore, #tpu.memory_space<semaphore_mem>> -> memref<!tpu.dma_semaphore, #tpu.memory_space<semaphore_mem>>
    tpu.wait_dma2 semaphore(%247 : memref<!tpu.dma_semaphore, #tpu.memory_space<semaphore_mem>>) src(%244 : memref<1x32xf32, #tpu.memory_space<vmem>>) dst(%245 : memref<1x32xf32, #tpu.memory_space<any>>)
    %c4_i32_183 = arith.constant 4 : i32
    %c4_i32_184 = arith.constant 4 : i32
    %c0_i32_185 = arith.constant 0 : i32
    %248 = tpu.memref_slice %arg4[%c4_i32_184, %c0_i32_185] : memref<8x32xf32, #tpu.memory_space<vmem>> -> memref<1x32xf32, #tpu.memory_space<vmem>>
    %c0_i32_186 = arith.constant 0 : i32
    %249 = tpu.memref_slice %arg3[%4, %c0_i32_186] : memref<64x32xf32, #tpu.memory_space<any>> -> memref<1x32xf32, #tpu.memory_space<any>>
    %250 = tpu.memref_slice %arg5[%c4_i32_183] : memref<8x!tpu.dma_semaphore, #tpu.memory_space<semaphore_mem>> -> memref<1x!tpu.dma_semaphore, #tpu.memory_space<semaphore_mem>>
    %251 = tpu.memref_squeeze %250 : memref<1x!tpu.dma_semaphore, #tpu.memory_space<semaphore_mem>> -> memref<!tpu.dma_semaphore, #tpu.memory_space<semaphore_mem>>
    tpu.wait_dma2 semaphore(%251 : memref<!tpu.dma_semaphore, #tpu.memory_space<semaphore_mem>>) src(%248 : memref<1x32xf32, #tpu.memory_space<vmem>>) dst(%249 : memref<1x32xf32, #tpu.memory_space<any>>)
    %c5_i32_187 = arith.constant 5 : i32
    %c5_i32_188 = arith.constant 5 : i32
    %c0_i32_189 = arith.constant 0 : i32
    %252 = tpu.memref_slice %arg4[%c5_i32_188, %c0_i32_189] : memref<8x32xf32, #tpu.memory_space<vmem>> -> memref<1x32xf32, #tpu.memory_space<vmem>>
    %c0_i32_190 = arith.constant 0 : i32
    %253 = tpu.memref_slice %arg3[%5, %c0_i32_190] : memref<64x32xf32, #tpu.memory_space<any>> -> memref<1x32xf32, #tpu.memory_space<any>>
    %254 = tpu.memref_slice %arg5[%c5_i32_187] : memref<8x!tpu.dma_semaphore, #tpu.memory_space<semaphore_mem>> -> memref<1x!tpu.dma_semaphore, #tpu.memory_space<semaphore_mem>>
    %255 = tpu.memref_squeeze %254 : memref<1x!tpu.dma_semaphore, #tpu.memory_space<semaphore_mem>> -> memref<!tpu.dma_semaphore, #tpu.memory_space<semaphore_mem>>
    tpu.wait_dma2 semaphore(%255 : memref<!tpu.dma_semaphore, #tpu.memory_space<semaphore_mem>>) src(%252 : memref<1x32xf32, #tpu.memory_space<vmem>>) dst(%253 : memref<1x32xf32, #tpu.memory_space<any>>)
    %c6_i32_191 = arith.constant 6 : i32
    %c6_i32_192 = arith.constant 6 : i32
    %c0_i32_193 = arith.constant 0 : i32
    %256 = tpu.memref_slice %arg4[%c6_i32_192, %c0_i32_193] : memref<8x32xf32, #tpu.memory_space<vmem>> -> memref<1x32xf32, #tpu.memory_space<vmem>>
    %c0_i32_194 = arith.constant 0 : i32
    %257 = tpu.memref_slice %arg3[%6, %c0_i32_194] : memref<64x32xf32, #tpu.memory_space<any>> -> memref<1x32xf32, #tpu.memory_space<any>>
    %258 = tpu.memref_slice %arg5[%c6_i32_191] : memref<8x!tpu.dma_semaphore, #tpu.memory_space<semaphore_mem>> -> memref<1x!tpu.dma_semaphore, #tpu.memory_space<semaphore_mem>>
    %259 = tpu.memref_squeeze %258 : memref<1x!tpu.dma_semaphore, #tpu.memory_space<semaphore_mem>> -> memref<!tpu.dma_semaphore, #tpu.memory_space<semaphore_mem>>
    tpu.wait_dma2 semaphore(%259 : memref<!tpu.dma_semaphore, #tpu.memory_space<semaphore_mem>>) src(%256 : memref<1x32xf32, #tpu.memory_space<vmem>>) dst(%257 : memref<1x32xf32, #tpu.memory_space<any>>)
    %c7_i32_195 = arith.constant 7 : i32
    %c7_i32_196 = arith.constant 7 : i32
    %c0_i32_197 = arith.constant 0 : i32
    %260 = tpu.memref_slice %arg4[%c7_i32_196, %c0_i32_197] : memref<8x32xf32, #tpu.memory_space<vmem>> -> memref<1x32xf32, #tpu.memory_space<vmem>>
    %c0_i32_198 = arith.constant 0 : i32
    %261 = tpu.memref_slice %arg3[%7, %c0_i32_198] : memref<64x32xf32, #tpu.memory_space<any>> -> memref<1x32xf32, #tpu.memory_space<any>>
    %262 = tpu.memref_slice %arg5[%c7_i32_195] : memref<8x!tpu.dma_semaphore, #tpu.memory_space<semaphore_mem>> -> memref<1x!tpu.dma_semaphore, #tpu.memory_space<semaphore_mem>>
    %263 = tpu.memref_squeeze %262 : memref<1x!tpu.dma_semaphore, #tpu.memory_space<semaphore_mem>> -> memref<!tpu.dma_semaphore, #tpu.memory_space<semaphore_mem>>
    tpu.wait_dma2 semaphore(%263 : memref<!tpu.dma_semaphore, #tpu.memory_space<semaphore_mem>>) src(%260 : memref<1x32xf32, #tpu.memory_space<vmem>>) dst(%261 : memref<1x32xf32, #tpu.memory_space<any>>)
    return
  }
}

</mosaic_0001>

<bundles_post_ra>
// kernel: fwd.2
= control target key start
LH: loop header
LB: loop body
LE: loop exit
PB: predicated region body
PF: predicated region fallthrough
CT: control target
= control target key end

     0   :  { %vm20_vm0 = vcmask 261120   ;;  %v122_v0 = vmov 0.0   ;;  %vm123_vm1 = vmmov 0   ;;  %v124_v4 = vmov 0   ;;  %s173_s1 = inlined_call_operand.vmem [shape: bf16[8,32], index: 1, kind: input, shape index: {}]   ;;  %s174_s2 = inlined_call_operand.vmem [shape: s32[8,1], index: 2, kind: input, shape index: {}]   ;;  %s175_s0 = inlined_call_operand.vmem [shape: bf16[8,32], index: 0, kind: input, shape index: {}]   ;;  %s176_s3 = inlined_call_operand.vmem [shape: f32[8,8], index: 3, kind: output, shape index: {0}]   ;;  %s177_s5 = inlined_call_operand.vmem [shape: f32[8,1], index: 5, kind: output, shape index: {2}]   ;;  %s178_s4 = inlined_call_operand.vmem [shape: f32[8,1], index: 4, kind: output, shape index: {1}]  }
   0x1   :  { %110 = vmatprep.subr.bf16.mxu0 %v122_v0  ;;  %v19_v1 = vld [vmem:[%s173_s1] sm:$0xf]  ;;  %112 = vmatprep.mubr.msk.bf16.mxu0 %vm123_vm1, %v122_v0  ;;  %v69_v11 = vlaneseq  ;;  %vm78_vm4 = vcmask 64512   ;;  %vm83_vm5 = vcmask 7168  }
   0x2   :  { %v85_v2 = vld [vmem:[%s174_s2] sm:$0xff]  ;;  %v25_v3 = vsel %vm20_vm0, %v19_v1, 0  ;;  %119 = vset.pattern.permute.xlu0 %v124_v4 }
   0x3   :  { %111 = vmatpush3.bf16.xpose.msra.mxu0 %v25_v3  ;;  %87 = vperm.xlu0 %119, %v85_v2   ;;  %v18_v5 = vld [vmem:[%s175_s0] sm:$0xf]  ;;  %v70_v12 = vand.u32 127, %v69_v11  ;;  %v73_v13 = vshrl.u32 %v69_v11, 7 }
   0x5   :  { %vm76_vm3 = vcmp.eq.s32.totalorder %v73_v13, %v70_v12 }
   0xa   :  { %113 = vmatmul.mubr.msk.bf16.vlgmr.msra.gmra.mxu0 %vm20_vm0, %v18_v5 }
  0x7e   :  { %v88_v14 = vpop.permute.xlu0 %87 }
  0x7f   :  { %vm89_vm2 = vcmp.eq.s32.totalorder %v70_v12, %v88_v14 }
  0xca   :  { %v61_v6 = vpop.f32.mrf.mxu0 }
  0xcb   :  { %v67_v7 = vmul.f32 1.442695, %v61_v6 }
  0xcc   :  { %v114_v8 = vpop.f32.mrf.mxu0 }
  0xcd   :  { %120 = vpow2.f32 %v67_v7 }
  0xce   :  { %v64_v9 = vpop.f32.mrf.mxu0 }
  0xd0   :  { %v115_v10 = vpop.f32.mrf.mxu0 }
  0xda   :  { %v121_v15 = vpop.eup %120 }
  0xdb   :  { %v90_v16 = vsel %vm89_vm2, %v121_v15, 0.0  ;;  %v77_v17 = vsel %vm76_vm3, 0.0, %v121_v15 }
  0xdc   :  { %v91_v18 = vsel %vm78_vm4, %v90_v16, 0.0  ;;  %v80_v19 = vsel %vm78_vm4, %v77_v17, 0.0  ;;  %79 = vst.msk [vmem:[%s176_s3] sm:$0xff] %vm78_vm4, %v77_v17 }
  0xdd   :  { %92 = vadd.xlane.f32.xlu1 %v91_v18  ;;  %81 = vadd.xlane.f32.xlu0 %v80_v19 }
 0x166   :  { %v93_v20 = vpop.xlane.xlu1 %92  ;;  %v82_v21 = vpop.xlane.xlu0 %81 }
 0x167   :  { %94 = vst.msk [vmem:[%s177_s5] sm:$0xff] %vm83_vm5, %v93_v20  ;;  %84 = vst.msk [vmem:[%s178_s4] sm:$0xff] %vm83_vm5, %v82_v21 }

// kernel: fwd.3
= control target key start
LH: loop header
LB: loop body
LE: loop exit
PB: predicated region body
PF: predicated region fallthrough
CT: control target
= control target key end

     0   :  { %8 = vsyncpa [#allocation5], 0  ;;  %s1405_s0 = inlined_call_operand.vmem [shape: s32[8], index: 0, kind: input, shape index: {}]   ;;  %s1406_s1 = inlined_call_operand.vmem [shape: f32[8,32], index: 1, kind: input, shape index: {}]   ;;  %s1407_s2 = inlined_call_operand.vmem [shape: f32[64,32], index: 2, kind: input, shape index: {}, may-alias: {2,3}]   ;;  %s1408_s3 = inlined_call_operand.vmem [shape: f32[64,32], index: 3, kind: output, shape index: {}, may-alias: {2,3}]  }
   0x1   :  { %s15_s14 = sshll.u32 %s1405_s0, 4  ;;  %s16_s14 = int_to_ptr.vmem [resolvable:$true] %s15_s14 }
   0x2   :  { %s1215_s15 = scalar_lea.vmem %s16_s14, 16  ;;  %p1220_p1 = scmp.lt.s32.totalorder %s16_s14, %s16_s14 }
   0x3   :  { %p1216_p0 = scmp.ne.s32.totalorder %s16_s14, %s1215_s15  ;;  %p1221_p2 = scmp.lt.s32.totalorder %s1215_s15, %s1215_s15 }
   0x5   :  { %p1222_p3 = por %p1221_p2, %p1220_p1 }
   0x7   :  { %p1223_p4 = pnand %p1222_p3, %p1216_p0 }
   0x9   :  { %1226 = shalt.err (!%p1223_p4)
}
   0xa   :  { %s1261_s16 = smov [#allocation4]  }
   0xb   :  { %18 = dma.vmem_to_smem %s16_s14, 16, %s1261_s16, [#allocation5]  }
   0xc   :  { %1227 = dma.done.wait [#allocation5], 16  }
   0xd   :  { %1228 = vsyncadd [#allocation5], 4294967280 }
   0xe   :  { %24 = sfence }
   0xf   :  { %s1285_s17 = sld [smem:[#allocation4]] }
  0x10   :  { %s1287_s18 = sld [smem:[#allocation4 + $0x1]] }
  0x11   :  { %s1289_s19 = sld [smem:[#allocation4 + $0x2]] }
  0x12   :  { %s1291_s0 = sld [smem:[#allocation4 + $0x3]] }
  0x13   :  { %s1293_s20 = sld [smem:[#allocation4 + $0x4]] }
  0x14   :  { %s1295_s21 = sld [smem:[#allocation4 + $0x5]] }
  0x15   :  { %s1297_s22 = sld [smem:[#allocation4 + $0x6]]  ;;  %s33_s25 = scalar_lea.vmem %s1407_s2, %s1285_s17 }
  0x16   :  { %s1303_s26 = sld [smem:[#allocation4 + $0x7]]  ;;  %v52_v0 = vld [vmem:[%s33_s25] sm:$0x1] }
  0x17   :  { %53 = vst [vmem:[#allocation2] sm:$0x1] %v52_v0 }
  0x18   :  { %79 = vsyncadd [#allocation3], 16  ;;  %s80_s29 = scalar_lea.vmem %s1407_s2, %s1287_s18 }
  0x19   :  { %v101_v1 = vld [vmem:[%s80_s29] sm:$0x1] }
  0x1a   :  { %102 = vst [vmem:[#allocation2 + $0x1] sm:$0x1] %v101_v1 }
  0x1b   :  { %128 = vsyncadd [#allocation3 + $0x1], 16  ;;  %s129_s5 = scalar_lea.vmem %s1407_s2, %s1289_s19 }
  0x1c   :  { %v150_v2 = vld [vmem:[%s129_s5] sm:$0x1] }
  0x1d   :  { %151 = vst [vmem:[#allocation2 + $0x2] sm:$0x1] %v150_v2 }
  0x1e   :  { %177 = vsyncadd [#allocation3 + $0x2], 16  ;;  %s178_s8 = scalar_lea.vmem %s1407_s2, %s1291_s0 }
  0x1f   :  { %v199_v3 = vld [vmem:[%s178_s8] sm:$0x1] }
  0x20   :  { %200 = vst [vmem:[#allocation2 + $0x3] sm:$0x1] %v199_v3 }
  0x21   :  { %226 = vsyncadd [#allocation3 + $0x3], 16  ;;  %s227_s11 = scalar_lea.vmem %s1407_s2, %s1293_s20 }
  0x22   :  { %v248_v4 = vld [vmem:[%s227_s11] sm:$0x1] }
  0x23   :  { %249 = vst [vmem:[#allocation2 + $0x4] sm:$0x1] %v248_v4 }
  0x24   :  { %275 = vsyncadd [#allocation3 + $0x4], 16  ;;  %s276_s14 = scalar_lea.vmem %s1407_s2, %s1295_s21 }
  0x25   :  { %v297_v5 = vld [vmem:[%s276_s14] sm:$0x1] }
  0x26   :  { %298 = vst [vmem:[#allocation2 + $0x5] sm:$0x1] %v297_v5 }
  0x27   :  { %324 = vsyncadd [#allocation3 + $0x5], 16  ;;  %s325_s23 = scalar_lea.vmem %s1407_s2, %s1297_s22 }
  0x28   :  { %v346_v6 = vld [vmem:[%s325_s23] sm:$0x1] }
  0x29   :  { %347 = vst [vmem:[#allocation2 + $0x6] sm:$0x1] %v346_v6 }
  0x2a   :  { %373 = vsyncadd [#allocation3 + $0x6], 16  ;;  %s374_s27 = scalar_lea.vmem %s1407_s2, %s1303_s26 }
  0x2b   :  { %v395_v7 = vld [vmem:[%s374_s27] sm:$0x1] }
  0x2c   :  { %396 = vst [vmem:[#allocation2 + $0x7] sm:$0x1] %v395_v7 }
  0x2d   :  { %422 = vsyncadd [#allocation3 + $0x7], 16 }
  0x2e   :  { %1229 = dma.done.wait [#allocation3], 16 }
  0x2f   :  { %1230 = vsyncadd [#allocation3], 4294967280  ;;  %v426_v8 = vld [vmem:[#allocation2] sm:$0x1]  ;;  %vm432_vm0 = vcmask 253952   ;;  %s440_s4 = scalar_lea.vmem %s1408_s3, %s1285_s17 }
  0x30   :  { %v428_v9 = vld [vmem:[%s1406_s1] sm:$0x1]  ;;  %v427_v10 = vmul.f32 0.5, %v426_v8 }
  0x31   :  { %v429_v11 = vmul.f32 0.5, %v428_v9 }
  0x33   :  { %v430_v12 = vadd.f32 %v429_v11, %v427_v10 }
  0x35   :  { %v431_v13 = vmul.f32 %v430_v12, %v430_v12 }
  0x37   :  { %v433_v14 = vsel %vm432_vm0, %v431_v13, 0.0 }
  0x38   :  { %434 = vadd.xlane.f32.xlu0 %v433_v14 }
  0xc1   :  { %v435_v15 = vpop.xlane.xlu0 %434 }
  0xc2   :  { %v436_v16 = vadd.f32 1e-12, %v435_v15 }
  0xc4   :  { %1199 = vrsqrt.f32 %v436_v16 }
  0xd1   :  { %v1200_v17 = vpop.eup %1199 }
  0xd2   :  { %v438_v18 = vmul.f32 %v1200_v17, %v430_v12 }
  0xd4   :  { %439 = vst.msk [vmem:[#allocation2] sm:$0x1] %vm432_vm0, %v438_v18 }
  0xdb   :  { %v459_v19 = vld [vmem:[#allocation2] sm:$0x1] }
  0xdc   :  { %460 = vst [vmem:[%s440_s4] sm:$0x1] %v459_v19 }
  0xdd   :  { %486 = vsyncadd [#allocation3], 16 }
  0xde   :  { %1231 = dma.done.wait [#allocation3 + $0x1], 16 }
  0xdf   :  { %1232 = vsyncadd [#allocation3 + $0x1], 4294967280  ;;  %v489_v20 = vld [vmem:[#allocation2 + $0x1] sm:$0x1]  ;;  %s502_s8 = scalar_lea.vmem %s1408_s3, %s1287_s18 }
  0xe0   :  { %v491_v21 = vld [vmem:[%s1406_s1 + $0x1] sm:$0x1]  ;;  %v490_v22 = vmul.f32 0.5, %v489_v20 }
  0xe1   :  { %v492_v23 = vmul.f32 0.5, %v491_v21 }
  0xe3   :  { %v493_v24 = vadd.f32 %v492_v23, %v490_v22 }
  0xe5   :  { %v494_v25 = vmul.f32 %v493_v24, %v493_v24 }
  0xe7   :  { %v495_v26 = vsel %vm432_vm0, %v494_v25, 0.0 }
  0xe8   :  { %496 = vadd.xlane.f32.xlu0 %v495_v26 }
 0x171   :  { %v497_v27 = vpop.xlane.xlu0 %496 }
 0x172   :  { %v498_v28 = vadd.f32 1e-12, %v497_v27 }
 0x174   :  { %1201 = vrsqrt.f32 %v498_v28 }
 0x181   :  { %v1202_v29 = vpop.eup %1201 }
 0x182   :  { %v500_v30 = vmul.f32 %v1202_v29, %v493_v24 }
 0x184   :  { %501 = vst.msk [vmem:[#allocation2 + $0x1] sm:$0x1] %vm432_vm0, %v500_v30 }
 0x18b   :  { %v521_v31 = vld [vmem:[#allocation2 + $0x1] sm:$0x1] }
 0x18c   :  { %522 = vst [vmem:[%s502_s8] sm:$0x1] %v521_v31 }
 0x18d   :  { %548 = vsyncadd [#allocation3 + $0x1], 16 }
 0x18e   :  { %1233 = dma.done.wait [#allocation3 + $0x2], 16 }
 0x18f   :  { %1234 = vsyncadd [#allocation3 + $0x2], 4294967280  ;;  %v551_v32 = vld [vmem:[#allocation2 + $0x2] sm:$0x1]  ;;  %s564_s12 = scalar_lea.vmem %s1408_s3, %s1289_s19 }
 0x190   :  { %v553_v33 = vld [vmem:[%s1406_s1 + $0x2] sm:$0x1]  ;;  %v552_v34 = vmul.f32 0.5, %v551_v32 }
 0x191   :  { %v554_v35 = vmul.f32 0.5, %v553_v33 }
 0x193   :  { %v555_v36 = vadd.f32 %v554_v35, %v552_v34 }
 0x195   :  { %v556_v37 = vmul.f32 %v555_v36, %v555_v36 }
 0x197   :  { %v557_v38 = vsel %vm432_vm0, %v556_v37, 0.0 }
 0x198   :  { %558 = vadd.xlane.f32.xlu0 %v557_v38 }
 0x221   :  { %v559_v39 = vpop.xlane.xlu0 %558 }
 0x222   :  { %v560_v40 = vadd.f32 1e-12, %v559_v39 }
 0x224   :  { %1203 = vrsqrt.f32 %v560_v40 }
 0x231   :  { %v1204_v41 = vpop.eup %1203 }
 0x232   :  { %v562_v42 = vmul.f32 %v1204_v41, %v555_v36 }
 0x234   :  { %563 = vst.msk [vmem:[#allocation2 + $0x2] sm:$0x1] %vm432_vm0, %v562_v42 }
 0x23b   :  { %v583_v43 = vld [vmem:[#allocation2 + $0x2] sm:$0x1] }
 0x23c   :  { %584 = vst [vmem:[%s564_s12] sm:$0x1] %v583_v43 }
 0x23d   :  { %610 = vsyncadd [#allocation3 + $0x2], 16 }
 0x23e   :  { %1235 = dma.done.wait [#allocation3 + $0x3], 16 }
 0x23f   :  { %1236 = vsyncadd [#allocation3 + $0x3], 4294967280  ;;  %v613_v44 = vld [vmem:[#allocation2 + $0x3] sm:$0x1]  ;;  %s626_s16 = scalar_lea.vmem %s1408_s3, %s1291_s0 }
 0x240   :  { %v615_v45 = vld [vmem:[%s1406_s1 + $0x3] sm:$0x1]  ;;  %v614_v46 = vmul.f32 0.5, %v613_v44 }
 0x241   :  { %v616_v47 = vmul.f32 0.5, %v615_v45 }
 0x243   :  { %v617_v48 = vadd.f32 %v616_v47, %v614_v46 }
 0x245   :  { %v618_v49 = vmul.f32 %v617_v48, %v617_v48 }
 0x247   :  { %v619_v50 = vsel %vm432_vm0, %v618_v49, 0.0 }
 0x248   :  { %620 = vadd.xlane.f32.xlu0 %v619_v50 }
 0x2d1   :  { %v621_v51 = vpop.xlane.xlu0 %620 }
 0x2d2   :  { %v622_v52 = vadd.f32 1e-12, %v621_v51 }
 0x2d4   :  { %1205 = vrsqrt.f32 %v622_v52 }
 0x2e1   :  { %v1206_v53 = vpop.eup %1205 }
 0x2e2   :  { %v624_v54 = vmul.f32 %v1206_v53, %v617_v48 }
 0x2e4   :  { %625 = vst.msk [vmem:[#allocation2 + $0x3] sm:$0x1] %vm432_vm0, %v624_v54 }
 0x2eb   :  { %v645_v55 = vld [vmem:[#allocation2 + $0x3] sm:$0x1] }
 0x2ec   :  { %646 = vst [vmem:[%s626_s16] sm:$0x1] %v645_v55 }
 0x2ed   :  { %672 = vsyncadd [#allocation3 + $0x3], 16 }
 0x2ee   :  { %1237 = dma.done.wait [#allocation3 + $0x4], 16 }
 0x2ef   :  { %1238 = vsyncadd [#allocation3 + $0x4], 4294967280  ;;  %v675_v56 = vld [vmem:[#allocation2 + $0x4] sm:$0x1]  ;;  %s688_s27 = scalar_lea.vmem %s1408_s3, %s1293_s20 }
 0x2f0   :  { %v677_v57 = vld [vmem:[%s1406_s1 + $0x4] sm:$0x1]  ;;  %v676_v58 = vmul.f32 0.5, %v675_v56 }
 0x2f1   :  { %v678_v59 = vmul.f32 0.5, %v677_v57 }
 0x2f3   :  { %v679_v60 = vadd.f32 %v678_v59, %v676_v58 }
 0x2f5   :  { %v680_v61 = vmul.f32 %v679_v60, %v679_v60 }
 0x2f7   :  { %v681_v62 = vsel %vm432_vm0, %v680_v61, 0.0 }
 0x2f8   :  { %682 = vadd.xlane.f32.xlu0 %v681_v62 }
 0x381   :  { %v683_v63 = vpop.xlane.xlu0 %682 }
 0x382   :  { %v684_v0 = vadd.f32 1e-12, %v683_v63 }
 0x384   :  { %1207 = vrsqrt.f32 %v684_v0 }
 0x391   :  { %v1208_v1 = vpop.eup %1207 }
 0x392   :  { %v686_v2 = vmul.f32 %v1208_v1, %v679_v60 }
 0x394   :  { %687 = vst.msk [vmem:[#allocation2 + $0x4] sm:$0x1] %vm432_vm0, %v686_v2 }
 0x39b   :  { %v707_v3 = vld [vmem:[#allocation2 + $0x4] sm:$0x1] }
 0x39c   :  { %708 = vst [vmem:[%s688_s27] sm:$0x1] %v707_v3 }
 0x39d   :  { %734 = vsyncadd [#allocation3 + $0x4], 16 }
 0x39e   :  { %1239 = dma.done.wait [#allocation3 + $0x5], 16 }
 0x39f   :  { %1240 = vsyncadd [#allocation3 + $0x5], 4294967280  ;;  %v737_v4 = vld [vmem:[#allocation2 + $0x5] sm:$0x1]  ;;  %s750_s30 = scalar_lea.vmem %s1408_s3, %s1295_s21 }
 0x3a0   :  { %v739_v5 = vld [vmem:[%s1406_s1 + $0x5] sm:$0x1]  ;;  %v738_v6 = vmul.f32 0.5, %v737_v4 }
 0x3a1   :  { %v740_v7 = vmul.f32 0.5, %v739_v5 }
 0x3a3   :  { %v741_v8 = vadd.f32 %v740_v7, %v738_v6 }
 0x3a5   :  { %v742_v9 = vmul.f32 %v741_v8, %v741_v8 }
 0x3a7   :  { %v743_v10 = vsel %vm432_vm0, %v742_v9, 0.0 }
 0x3a8   :  { %744 = vadd.xlane.f32.xlu0 %v743_v10 }
 0x431   :  { %v745_v11 = vpop.xlane.xlu0 %744 }
 0x432   :  { %v746_v12 = vadd.f32 1e-12, %v745_v11 }
 0x434   :  { %1209 = vrsqrt.f32 %v746_v12 }
 0x441   :  { %v1210_v13 = vpop.eup %1209 }
 0x442   :  { %v748_v14 = vmul.f32 %v1210_v13, %v741_v8 }
 0x444   :  { %749 = vst.msk [vmem:[#allocation2 + $0x5] sm:$0x1] %vm432_vm0, %v748_v14 }
 0x44b   :  { %v769_v15 = vld [vmem:[#allocation2 + $0x5] sm:$0x1] }
 0x44c   :  { %770 = vst [vmem:[%s750_s30] sm:$0x1] %v769_v15 }
 0x44d   :  { %796 = vsyncadd [#allocation3 + $0x5], 16 }
 0x44e   :  { %1241 = dma.done.wait [#allocation3 + $0x6], 16 }
 0x44f   :  { %1242 = vsyncadd [#allocation3 + $0x6], 4294967280  ;;  %v799_v16 = vld [vmem:[#allocation2 + $0x6] sm:$0x1]  ;;  %s812_s17 = scalar_lea.vmem %s1408_s3, %s1297_s22 }
 0x450   :  { %v801_v17 = vld [vmem:[%s1406_s1 + $0x6] sm:$0x1]  ;;  %v800_v18 = vmul.f32 0.5, %v799_v16 }
 0x451   :  { %v802_v19 = vmul.f32 0.5, %v801_v17 }
 0x453   :  { %v803_v20 = vadd.f32 %v802_v19, %v800_v18 }
 0x455   :  { %v804_v21 = vmul.f32 %v803_v20, %v803_v20 }
 0x457   :  { %v805_v22 = vsel %vm432_vm0, %v804_v21, 0.0 }
 0x458   :  { %806 = vadd.xlane.f32.xlu0 %v805_v22 }
 0x4e1   :  { %v807_v23 = vpop.xlane.xlu0 %806 }
 0x4e2   :  { %v808_v24 = vadd.f32 1e-12, %v807_v23 }
 0x4e4   :  { %1211 = vrsqrt.f32 %v808_v24 }
 0x4f1   :  { %v1212_v25 = vpop.eup %1211 }
 0x4f2   :  { %v810_v26 = vmul.f32 %v1212_v25, %v803_v20 }
 0x4f4   :  { %811 = vst.msk [vmem:[#allocation2 + $0x6] sm:$0x1] %vm432_vm0, %v810_v26 }
 0x4fb   :  { %v831_v27 = vld [vmem:[#allocation2 + $0x6] sm:$0x1] }
 0x4fc   :  { %832 = vst [vmem:[%s812_s17] sm:$0x1] %v831_v27 }
 0x4fd   :  { %858 = vsyncadd [#allocation3 + $0x6], 16 }
 0x4fe   :  { %1243 = dma.done.wait [#allocation3 + $0x7], 16 }
 0x4ff   :  { %1244 = vsyncadd [#allocation3 + $0x7], 4294967280  ;;  %v861_v28 = vld [vmem:[#allocation2 + $0x7] sm:$0x1]  ;;  %s874_s10 = scalar_lea.vmem %s1408_s3, %s1303_s26 }
 0x500   :  { %v863_v29 = vld [vmem:[%s1406_s1 + $0x7] sm:$0x1]  ;;  %v862_v30 = vmul.f32 0.5, %v861_v28 }
 0x501   :  { %v864_v31 = vmul.f32 0.5, %v863_v29 }
 0x503   :  { %v865_v32 = vadd.f32 %v864_v31, %v862_v30 }
 0x505   :  { %v866_v33 = vmul.f32 %v865_v32, %v865_v32 }
 0x507   :  { %v867_v34 = vsel %vm432_vm0, %v866_v33, 0.0 }
 0x508   :  { %868 = vadd.xlane.f32.xlu0 %v867_v34 }
 0x591   :  { %v869_v35 = vpop.xlane.xlu0 %868 }
 0x592   :  { %v870_v36 = vadd.f32 1e-12, %v869_v35 }
 0x594   :  { %1213 = vrsqrt.f32 %v870_v36 }
 0x5a1   :  { %v1214_v37 = vpop.eup %1213 }
 0x5a2   :  { %v872_v38 = vmul.f32 %v1214_v37, %v865_v32 }
 0x5a4   :  { %873 = vst.msk [vmem:[#allocation2 + $0x7] sm:$0x1] %vm432_vm0, %v872_v38 }
 0x5ab   :  { %v893_v39 = vld [vmem:[#allocation2 + $0x7] sm:$0x1] }
 0x5ac   :  { %894 = vst [vmem:[%s874_s10] sm:$0x1] %v893_v39 }
 0x5ad   :  { %920 = vsyncadd [#allocation3 + $0x7], 16 }
 0x5ae   :  { %1245 = dma.done.wait [#allocation3], 16 }
 0x5af   :  { %1246 = vsyncadd [#allocation3], 4294967280 }
 0x5b0   :  { %1247 = dma.done.wait [#allocation3 + $0x1], 16 }
 0x5b1   :  { %1248 = vsyncadd [#allocation3 + $0x1], 4294967280 }
 0x5b2   :  { %1249 = dma.done.wait [#allocation3 + $0x2], 16 }
 0x5b3   :  { %1250 = vsyncadd [#allocation3 + $0x2], 4294967280 }
 0x5b4   :  { %1251 = dma.done.wait [#allocation3 + $0x3], 16 }
 0x5b5   :  { %1252 = vsyncadd [#allocation3 + $0x3], 4294967280 }
 0x5b6   :  { %1253 = dma.done.wait [#allocation3 + $0x4], 16 }
 0x5b7   :  { %1254 = vsyncadd [#allocation3 + $0x4], 4294967280 }
 0x5b8   :  { %1255 = dma.done.wait [#allocation3 + $0x5], 16 }
 0x5b9   :  { %1256 = vsyncadd [#allocation3 + $0x5], 4294967280 }
 0x5ba   :  { %1257 = dma.done.wait [#allocation3 + $0x6], 16 }
 0x5bb   :  { %1258 = vsyncadd [#allocation3 + $0x6], 4294967280 }
 0x5bc   :  { %1259 = dma.done.wait [#allocation3 + $0x7], 16 }
 0x5bd   :  { %1260 = vsyncadd [#allocation3 + $0x7], 4294967280 }
 0x5be   :  { %937 = vsyncpa [#allocation5], 1 }
 0x5bf   :  { %938 = vsyncmov [#allocation3] }
 0x5c2   :  { %s939_s1 = vpop.sfrf %938 }
 0x5c3   :  { %p1190_p5 = scmp.ne.s32.totalorder %s939_s1, 0 }
 0x5c5   :  { %943 = shalt.err (%p1190_p5)  }
 0x5c6   :  { %945 = vsyncmov [#allocation3 + $0x1] }
 0x5c9   :  { %s946_s3 = vpop.sfrf %945 }
 0x5ca   :  { %p1191_p6 = scmp.ne.s32.totalorder %s946_s3, 0 }
 0x5cc   :  { %950 = shalt.err (%p1191_p6)  }
 0x5cd   :  { %952 = vsyncmov [#allocation3 + $0x2] }
 0x5d0   :  { %s953_s26 = vpop.sfrf %952 }
 0x5d1   :  { %p1192_p7 = scmp.ne.s32.totalorder %s953_s26, 0 }
 0x5d3   :  { %957 = shalt.err (%p1192_p7)  }
 0x5d4   :  { %959 = vsyncmov [#allocation3 + $0x3] }
 0x5d7   :  { %s960_s18 = vpop.sfrf %959 }
 0x5d8   :  { %p1193_p8 = scmp.ne.s32.totalorder %s960_s18, 0 }
 0x5da   :  { %964 = shalt.err (%p1193_p8)  }
 0x5db   :  { %966 = vsyncmov [#allocation3 + $0x4] }
 0x5de   :  { %s967_s11 = vpop.sfrf %966 }
 0x5df   :  { %p1194_p9 = scmp.ne.s32.totalorder %s967_s11, 0 }
 0x5e1   :  { %971 = shalt.err (%p1194_p9)  }
 0x5e2   :  { %973 = vsyncmov [#allocation3 + $0x5] }
 0x5e5   :  { %s974_s12 = vpop.sfrf %973 }
 0x5e6   :  { %p1195_p10 = scmp.ne.s32.totalorder %s974_s12, 0 }
 0x5e8   :  { %978 = shalt.err (%p1195_p10)  }
 0x5e9   :  { %980 = vsyncmov [#allocation3 + $0x6] }
 0x5ec   :  { %s981_s13 = vpop.sfrf %980 }
 0x5ed   :  { %p1196_p11 = scmp.ne.s32.totalorder %s981_s13, 0 }
 0x5ef   :  { %985 = shalt.err (%p1196_p11)  }
 0x5f0   :  { %987 = vsyncmov [#allocation3 + $0x7] }
 0x5f3   :  { %s988_s14 = vpop.sfrf %987 }
 0x5f4   :  { %p1197_p12 = scmp.ne.s32.totalorder %s988_s14, 0 }
 0x5f6   :  { %992 = shalt.err (%p1197_p12)  }

</bundles_post_ra>
